<compile_context>
chip_gen: v7x
topology: tpu7x:2x2x1
jax: 0.10.0
libtpu: 0.0.40
codegen_flags: <defaults>
</compile_context>

<pallas_src>
import functools

import jax
import jax.numpy as jnp
import numpy as np
from jax import lax
from jax.experimental import pallas as pl
from jax.experimental.pallas import tpu as pltpu


def _sigmoid(x):
    return 1.0 / (1.0 + jnp.exp(-x))


def mpnn_kernel(
    node_ref, edge_ref, src_oh_ref, dst_oh_t_ref, rmat_ref, smat_ref,
    w_proj_ref, b_proj_ref,
    w_edge_ref, b_edge_ref, b_conv_ref,
    w_gru_ref, b_gru_ref,
    w_lstm_ref, b_lstm_ref,
    w_sp_ref, b_sp_ref, prelu_ref,
    out_ref,
    *, hidden, num_mp, num_s2s,
):
    H = hidden
    f32 = jnp.float32

    # ---- project_node_feats: Linear(node_in, H) + ReLU ----
    x0 = jnp.maximum(
        jnp.dot(node_ref[...], w_proj_ref[...], preferred_element_type=f32)
        + b_proj_ref[...], 0.0)                                              # [N, H]

    # ---- edge network: per-edge (H x H) weights, flat [E, H*H] (row-major h*H+o) ----
    w_flat = (jnp.dot(edge_ref[...], w_edge_ref[...], preferred_element_type=f32)
              + b_edge_ref[...])                                             # [E, H*H]

    # bf16 exact-0/1 structural matrices -> f32 in-kernel
    src_oh = src_oh_ref[...].astype(f32)      # [E, N]  one-hot of edge source node
    dst_oh_t = dst_oh_t_ref[...].astype(f32)  # [N, E]  transposed one-hot of edge dest
    rmat = rmat_ref[...].astype(f32)          # [H, H*H]   rmat[h, h*H+o] = 1 (expand)
    smat = smat_ref[...].astype(f32)          # [H*H, H]   smat[h*H+o, o] = 1 (select)

    w_gru = w_gru_ref[...]                    # [2H, 4H] fused (r | z | n_in | n_hid)
    b_gru = b_gru_ref[...]                    # [1, 4H]
    b_conv = b_conv_ref[...]                  # [1, H]

    # ---- message passing (fori_loop carry = GRU hidden state, bounded live ranges) ----
    def mp_body(_, h):
        # NNConv (sum aggregator), reassociated: scatter first, select second.
        h_src = jnp.dot(src_oh, h, preferred_element_type=f32)               # [E, H]
        h_big = jnp.dot(h_src, rmat, preferred_element_type=f32)             # [E, H*H]
        scat = jnp.dot(dst_oh_t, h_big * w_flat, preferred_element_type=f32)  # [N, H*H]
        agg = jnp.dot(scat, smat, preferred_element_type=f32) + b_conv       # [N, H]
        x_in = jnp.maximum(agg, 0.0)                                          # ReLU

        # GRU cell (seq_len=1), one fused matmul; PyTorch gate order (r, z, n).
        g = jnp.dot(jnp.concatenate([x_in, h], axis=1), w_gru,
                    preferred_element_type=f32) + b_gru                       # [N, 4H]
        rz = _sigmoid(g[:, :2 * H])
        r = rz[:, :H]
        z = rz[:, H:]
        n = jnp.tanh(g[:, 2 * H:3 * H] + r * g[:, 3 * H:4 * H])
        return (1.0 - z) * n + z * h

    x = lax.fori_loop(0, num_mp, mp_body, x0)

    feat = jnp.concatenate([x0, x], axis=1)    # node_aggr, [N, 2H]

    # ---- Set2Set readout (single graph => batch 1), LSTM(4H -> 2H), gates (i,f,g,o) ----
    w_lstm = w_lstm_ref[...]                   # [6H, 8H] fused (wih ; whh)
    b_lstm = b_lstm_ref[...]                   # [1, 8H]  (bih + bhh)

    def s2s_body(_, carry):
        lstm_h, lstm_c, q_star = carry
        zin = jnp.concatenate([q_star, lstm_h], axis=1)                       # [1, 6H]
        gates = jnp.dot(zin, w_lstm, preferred_element_type=f32) + b_lstm     # [1, 8H]
        i_g = _sigmoid(gates[:, 0:2 * H])
        f_g = _sigmoid(gates[:, 2 * H:4 * H])
        g_g = jnp.tanh(gates[:, 4 * H:6 * H])
        o_g = _sigmoid(gates[:, 6 * H:8 * H])
        lstm_c = f_g * lstm_c + i_g * g_g
        lstm_h = o_g * jnp.tanh(lstm_c)
        q = lstm_h                                                            # [1, 2H]

        # attention score on the MXU: q [1,2H] . feat [N,2H]^T -> [1, N] (lane softmax)
        e = lax.dot_general(q, feat, (((1,), (1,)), ((), ())),
                            preferred_element_type=f32)                       # [1, N]
        e = e - jnp.max(e, axis=1, keepdims=True)
        alpha = jnp.exp(e)
        denom = jnp.sum(alpha, axis=1, keepdims=True)                         # [1, 1]
        alpha = alpha * pl.reciprocal(denom, approx=True)                     # EUP recip
        readout = jnp.dot(alpha, feat, preferred_element_type=f32)            # [1, 2H]
        q_star = jnp.concatenate([q, readout], axis=1)                        # [1, 4H]
        return (lstm_h, lstm_c, q_star)

    init = (jnp.zeros((1, 2 * H), f32), jnp.zeros((1, 2 * H), f32),
            jnp.zeros((1, 4 * H), f32))
    _, _, q_star = lax.fori_loop(0, num_s2s, s2s_body, init)

    # ---- sparsify: Linear(4H, R) + PReLU (single shared slope) ----
    out = jnp.dot(q_star, w_sp_ref[...], preferred_element_type=f32) + b_sp_ref[...]
    a = prelu_ref[...]                                                        # [1, 1]
    out_ref[...] = jnp.where(out > 0.0, out, a * out)


def make_params(key, node_in, edge_in, H, R):
    ks = jax.random.split(key, 15)

    def w(k, shape, scale=0.1):
        return jax.random.normal(k, shape, jnp.float32) * scale

    return dict(
        w_proj=w(ks[0], (node_in, H)),
        b_proj=w(ks[1], (1, H)),
        w_edge=w(ks[2], (edge_in, H * H)),
        b_edge=w(ks[3], (1, H * H)),
        b_conv=w(ks[4], (1, H)),                  # NNConv bias
        gru_wih=w(ks[5], (H, 3 * H)),
        gru_whh=w(ks[6], (H, 3 * H)),
        gru_bih=w(ks[7], (1, 3 * H)),
        gru_bhh=w(ks[8], (1, 3 * H)),
        lstm_wih=w(ks[9], (4 * H, 8 * H)),        # Set2Set LSTM: input 4H, hidden 2H
        lstm_whh=w(ks[10], (2 * H, 8 * H)),
        lstm_bih=w(ks[11], (1, 8 * H)),
        lstm_bhh=w(ks[12], (1, 8 * H)),
        w_sp=w(ks[13], (4 * H, R)),
        b_sp=w(ks[14], (1, R)),
        prelu_a=jnp.full((1, 1), 0.25, jnp.float32),
    )


def _fuse_gru(params, H):
    """[2H, 4H] fused GRU weight (columns r | z | n_input | n_hidden) + [1, 4H] bias."""
    wih, whh = params['gru_wih'], params['gru_whh']
    bih, bhh = params['gru_bih'], params['gru_bhh']
    zeros = jnp.zeros((H, H), jnp.float32)
    w = jnp.concatenate([
        jnp.concatenate([wih[:, :2 * H], wih[:, 2 * H:], zeros], axis=1),   # rows for x_in
        jnp.concatenate([whh[:, :2 * H], zeros, whh[:, 2 * H:]], axis=1),   # rows for h
    ], axis=0)
    b = jnp.concatenate([bih[:, :2 * H] + bhh[:, :2 * H],
                         bih[:, 2 * H:], bhh[:, 2 * H:]], axis=1)
    return w, b


def _fuse_lstm(params):
    """[6H, 8H] fused Set2Set LSTM weight + [1, 8H] bias (exact fusion)."""
    w = jnp.concatenate([params['lstm_wih'], params['lstm_whh']], axis=0)
    b = params['lstm_bih'] + params['lstm_bhh']
    return w, b


def mpnn_forward(node_feats, edge_feats, src, dst, params, *,
                 hidden, num_mp, num_s2s, readout_feats):
    """node_feats: [B,N,node_in], edge_feats: [B,E,edge_in], src/dst: [B,E] -> [B,R]."""
    H = hidden
    B, N, _ = node_feats.shape
    _, E, _ = edge_feats.shape
    R = readout_feats

    # bf16 exact-0/1 one-hots (half the DMA/VMEM of f32)
    src_oh = jax.nn.one_hot(src, N, dtype=jnp.bfloat16)                     # [B, E, N]
    dst_oh_t = jnp.swapaxes(jax.nn.one_hot(dst, N, dtype=jnp.bfloat16), 1, 2)  # [B, N, E]

    # constant 0/1 expand/select matrices for the per-edge weighted sum (bf16, exact)
    k = np.arange(H * H)
    rmat = jnp.asarray(k[None, :] // H == np.arange(H)[:, None], jnp.bfloat16)  # [H, H*H]
    smat = jnp.asarray(k[:, None] % H == np.arange(H)[None, :], jnp.bfloat16)   # [H*H, H]

    w_gru_f, b_gru_f = _fuse_gru(params, H)
    w_lstm_f, b_lstm_f = _fuse_lstm(params)

    per_graph = (node_feats, edge_feats, src_oh, dst_oh_t)
    shared = (rmat, smat,
              params['w_proj'], params['b_proj'],
              params['w_edge'], params['b_edge'], params['b_conv'],
              w_gru_f, b_gru_f, w_lstm_f, b_lstm_f,
              params['w_sp'], params['b_sp'], params['prelu_a'])

    def _graph_spec(arr):
        nd = arr.ndim
        return pl.BlockSpec((pl.Squeezed(),) + tuple(arr.shape[1:]),
                            lambda b, nd=nd: (b,) + (0,) * (nd - 1))

    def _shared_spec(arr):
        nd = arr.ndim
        return pl.BlockSpec(arr.shape, lambda b, nd=nd: (0,) * nd)

    in_specs = [_graph_spec(a) for a in per_graph] + [_shared_spec(a) for a in shared]

    grid_spec = pltpu.PrefetchScalarGridSpec(
        num_scalar_prefetch=0,
        grid=(B,),
        in_specs=in_specs,
        # output [B, 1, R]: block last two dims equal full dims, R lane-dense (128k)
        out_specs=pl.BlockSpec((pl.Squeezed(), 1, R), lambda b: (b, 0, 0)),
    )

    kernel = functools.partial(mpnn_kernel, hidden=hidden,
                               num_mp=num_mp, num_s2s=num_s2s)
    out = pl.pallas_call(
        kernel,
        out_shape=jax.ShapeDtypeStruct((B, 1, R), jnp.float32),
        grid_spec=grid_spec,
        compiler_params=pltpu.CompilerParams(
            dimension_semantics=("parallel",),          # shards graphs across v7x's 2 TCs
            vmem_limit_bytes=32 * 1024 * 1024),          # well under v7x's 64 MiB VMEM
    )(*per_graph, *shared)
    return out.reshape(B, R)


def mpnn_reference(node_feats, edge_feats, src, dst, params, *, hidden, num_mp, num_s2s):
    """Pure-JAX reference (single graph) mirroring the PyTorch/DGL forward semantics."""
    H = hidden
    n_nodes = node_feats.shape[0]
    x = jnp.maximum(node_feats @ params['w_proj'] + params['b_proj'], 0.0)
    x0 = x
    h_gru = x
    w3 = (edge_feats @ params['w_edge'] + params['b_edge']).reshape(-1, H, H)
    for _ in range(num_mp):
        h_src = x[src]
        m = jnp.einsum('eh,eho->eo', h_src, w3)
        agg = jnp.zeros((n_nodes, H), jnp.float32).at[dst].add(m) + params['b_conv']
        x_in = jnp.maximum(agg, 0.0)
        gi = x_in @ params['gru_wih'] + params['gru_bih']
        gh = h_gru @ params['gru_whh'] + params['gru_bhh']
        r = jax.nn.sigmoid(gi[:, :H] + gh[:, :H])
        z = jax.nn.sigmoid(gi[:, H:2 * H] + gh[:, H:2 * H])
        n = jnp.tanh(gi[:, 2 * H:] + r * gh[:, 2 * H:])
        h_gru = (1.0 - z) * n + z * h_gru
        x = h_gru
    feat = jnp.concatenate([x0, x], axis=1)
    lstm_h = jnp.zeros((1, 2 * H), jnp.float32)
    lstm_c = jnp.zeros((1, 2 * H), jnp.float32)
    q_star = jnp.zeros((1, 4 * H), jnp.float32)
    for _ in range(num_s2s):
        gates = (q_star @ params['lstm_wih'] + params['lstm_bih']
                 + lstm_h @ params['lstm_whh'] + params['lstm_bhh'])
        i_g = jax.nn.sigmoid(gates[:, :2 * H])
        f_g = jax.nn.sigmoid(gates[:, 2 * H:4 * H])
        g_g = jnp.tanh(gates[:, 4 * H:6 * H])
        o_g = jax.nn.sigmoid(gates[:, 6 * H:8 * H])
        lstm_c = f_g * lstm_c + i_g * g_g
        lstm_h = o_g * jnp.tanh(lstm_c)
        q = lstm_h
        e = jnp.sum(feat * q, axis=1, keepdims=True)
        alpha = jax.nn.softmax(e, axis=0)
        readout = jnp.sum(feat * alpha, axis=0, keepdims=True)
        q_star = jnp.concatenate([q, readout], axis=1)
    out = q_star @ params['w_sp'] + params['b_sp']
    a = params['prelu_a']
    return jnp.where(out > 0.0, out, a * out)


if __name__ == "__main__":
    NODE_IN, EDGE_IN = 16, 8
    HIDDEN = 32
    READOUT = 128          # multiple of 128 -> lane-dense output stores
    NUM_MP = 3
    NUM_S2S = 3
    B, N_NODES, N_EDGES = 4, 8, 16

    key = jax.random.PRNGKey(0)
    k_node, k_edge, k_src, k_dst, k_par = jax.random.split(key, 5)
    node_feats = jax.random.normal(k_node, (B, N_NODES, NODE_IN), jnp.float32)
    edge_feats = jax.random.normal(k_edge, (B, N_EDGES, EDGE_IN), jnp.float32)
    src = jax.random.randint(k_src, (B, N_EDGES), 0, N_NODES)
    dst = jax.random.randint(k_dst, (B, N_EDGES), 0, N_NODES)
    params = make_params(k_par, NODE_IN, EDGE_IN, HIDDEN, READOUT)

    out = mpnn_forward(node_feats, edge_feats, src, dst, params,
                       hidden=HIDDEN, num_mp=NUM_MP, num_s2s=NUM_S2S,
                       readout_feats=READOUT)
    out = jax.block_until_ready(out)

    ref = jnp.stack([
        mpnn_reference(node_feats[b], edge_feats[b], src[b], dst[b], params,
                       hidden=HIDDEN, num_mp=NUM_MP, num_s2s=NUM_S2S)[0]
        for b in range(B)], axis=0)

    # tolerance covers pl.reciprocal(approx=True) in the softmax + f32 reassociation order
    np.testing.assert_allclose(np.asarray(out), np.asarray(ref), rtol=3e-3, atol=3e-3)
    print("KERNEL_OK")
</pallas_src>

<mosaic_0001>
module attributes {stable_mosaic.version = 11 : i64} {
  func.func @mpnn_kernel(%arg0: i32, %arg1: memref<1x8x16xf32, #tpu.memory_space<vmem>>, %arg2: memref<1x16x8xf32, #tpu.memory_space<vmem>>, %arg3: memref<1x16x8xbf16, #tpu.memory_space<vmem>>, %arg4: memref<1x8x16xbf16, #tpu.memory_space<vmem>>, %arg5: memref<32x1024xbf16, #tpu.memory_space<vmem>>, %arg6: memref<1024x32xbf16, #tpu.memory_space<vmem>>, %arg7: memref<16x32xf32, #tpu.memory_space<vmem>>, %arg8: memref<1x32xf32, #tpu.memory_space<vmem>>, %arg9: memref<8x1024xf32, #tpu.memory_space<vmem>>, %arg10: memref<1x1024xf32, #tpu.memory_space<vmem>>, %arg11: memref<1x32xf32, #tpu.memory_space<vmem>>, %arg12: memref<64x128xf32, #tpu.memory_space<vmem>>, %arg13: memref<1x128xf32, #tpu.memory_space<vmem>>, %arg14: memref<192x256xf32, #tpu.memory_space<vmem>>, %arg15: memref<1x256xf32, #tpu.memory_space<vmem>>, %arg16: memref<128x128xf32, #tpu.memory_space<vmem>>, %arg17: memref<1x128xf32, #tpu.memory_space<vmem>>, %arg18: memref<1x1xf32, #tpu.memory_space<vmem>>, %arg19: memref<1x1x128xf32, #tpu.memory_space<vmem>>) attributes {dimension_semantics = [#tpu.dimension_semantics<parallel>], iteration_bounds = array<i64: 4>, scalar_prefetch = 0 : i64, scratch_operands = 0 : i64, tpu.core_type = #tpu.core_type<tc>, window_params = [{transform_indices = @transform_0, window_bounds = array<i64: 1, 8, 16>}, {transform_indices = @transform_1, window_bounds = array<i64: 1, 16, 8>}, {transform_indices = @transform_2, window_bounds = array<i64: 1, 16, 8>}, {transform_indices = @transform_3, window_bounds = array<i64: 1, 8, 16>}, {pipeline_mode = #tpu.pipeline_mode<synchronous>, transform_indices = @transform_4, window_bounds = array<i64: 32, 1024>}, {pipeline_mode = #tpu.pipeline_mode<synchronous>, transform_indices = @transform_5, window_bounds = array<i64: 1024, 32>}, {pipeline_mode = #tpu.pipeline_mode<synchronous>, transform_indices = @transform_6, window_bounds = array<i64: 16, 32>}, {pipeline_mode = #tpu.pipeline_mode<synchronous>, transform_indices = @transform_7, window_bounds = array<i64: 1, 32>}, {pipeline_mode = #tpu.pipeline_mode<synchronous>, transform_indices = @transform_8, window_bounds = array<i64: 8, 1024>}, {pipeline_mode = #tpu.pipeline_mode<synchronous>, transform_indices = @transform_9, window_bounds = array<i64: 1, 1024>}, {pipeline_mode = #tpu.pipeline_mode<synchronous>, transform_indices = @transform_10, window_bounds = array<i64: 1, 32>}, {pipeline_mode = #tpu.pipeline_mode<synchronous>, transform_indices = @transform_11, window_bounds = array<i64: 64, 128>}, {pipeline_mode = #tpu.pipeline_mode<synchronous>, transform_indices = @transform_12, window_bounds = array<i64: 1, 128>}, {pipeline_mode = #tpu.pipeline_mode<synchronous>, transform_indices = @transform_13, window_bounds = array<i64: 192, 256>}, {pipeline_mode = #tpu.pipeline_mode<synchronous>, transform_indices = @transform_14, window_bounds = array<i64: 1, 256>}, {pipeline_mode = #tpu.pipeline_mode<synchronous>, transform_indices = @transform_15, window_bounds = array<i64: 128, 128>}, {pipeline_mode = #tpu.pipeline_mode<synchronous>, transform_indices = @transform_16, window_bounds = array<i64: 1, 128>}, {pipeline_mode = #tpu.pipeline_mode<synchronous>, transform_indices = @transform_17, window_bounds = array<i64: 1, 1>}, {transform_indices = @transform_18, window_bounds = array<i64: 1, 1, 128>}]} {
    %c0 = arith.constant 0 : index
    %c0_0 = arith.constant 0 : index
    %c0_1 = arith.constant 0 : index
    %0 = vector.load %arg1[%c0, %c0_0, %c0_1] : memref<1x8x16xf32, #tpu.memory_space<vmem>>, vector<1x8x16xf32>
    %1 = vector.shape_cast %0 : vector<1x8x16xf32> to vector<8x16xf32>
    %c0_2 = arith.constant 0 : index
    %c0_3 = arith.constant 0 : index
    %2 = vector.load %arg7[%c0_2, %c0_3] : memref<16x32xf32, #tpu.memory_space<vmem>>, vector<16x32xf32>
    %cst = arith.constant dense<0.000000e+00> : vector<8x32xf32>
    %3 = tpu.matmul %1, %2, %cst {dimension_numbers = #tpu.dot_dimension_numbers<[1], [0], [0], [1], [0, 0, 1, 1], [], []>} : vector<8x16xf32>, vector<16x32xf32>, vector<8x32xf32> -> vector<8x32xf32>
    %c0_4 = arith.constant 0 : index
    %c0_5 = arith.constant 0 : index
    %4 = vector.load %arg8[%c0_4, %c0_5] : memref<1x32xf32, #tpu.memory_space<vmem>>, vector<1x32xf32>
    %5 = vector.broadcast %4 : vector<1x32xf32> to vector<8x32xf32>
    %6 = arith.addf %3, %5 : vector<8x32xf32>
    %cst_6 = arith.constant 0.000000e+00 : f32
    %7 = vector.broadcast %cst_6 : f32 to vector<8x32xf32>
    %8 = arith.maximumf %6, %7 : vector<8x32xf32>
    %c0_7 = arith.constant 0 : index
    %c0_8 = arith.constant 0 : index
    %c0_9 = arith.constant 0 : index
    %9 = vector.load %arg2[%c0_7, %c0_8, %c0_9] : memref<1x16x8xf32, #tpu.memory_space<vmem>>, vector<1x16x8xf32>
    %10 = vector.shape_cast %9 : vector<1x16x8xf32> to vector<16x8xf32>
    %c0_10 = arith.constant 0 : index
    %c0_11 = arith.constant 0 : index
    %11 = vector.load %arg9[%c0_10, %c0_11] : memref<8x1024xf32, #tpu.memory_space<vmem>>, vector<8x1024xf32>
    %cst_12 = arith.constant dense<0.000000e+00> : vector<16x1024xf32>
    %12 = tpu.matmul %10, %11, %cst_12 {dimension_numbers = #tpu.dot_dimension_numbers<[1], [0], [0], [1], [0, 0, 1, 1], [], []>} : vector<16x8xf32>, vector<8x1024xf32>, vector<16x1024xf32> -> vector<16x1024xf32>
    %c0_13 = arith.constant 0 : index
    %c0_14 = arith.constant 0 : index
    %13 = vector.load %arg10[%c0_13, %c0_14] : memref<1x1024xf32, #tpu.memory_space<vmem>>, vector<1x1024xf32>
    %14 = vector.broadcast %13 : vector<1x1024xf32> to vector<16x1024xf32>
    %15 = arith.addf %12, %14 : vector<16x1024xf32>
    %c0_15 = arith.constant 0 : index
    %c0_16 = arith.constant 0 : index
    %c0_17 = arith.constant 0 : index
    %16 = vector.load %arg3[%c0_15, %c0_16, %c0_17] : memref<1x16x8xbf16, #tpu.memory_space<vmem>>, vector<1x16x8xbf16>
    %17 = vector.shape_cast %16 : vector<1x16x8xbf16> to vector<16x8xbf16>
    %18 = arith.extf %17 : vector<16x8xbf16> to vector<16x8xf32>
    %c0_18 = arith.constant 0 : index
    %c0_19 = arith.constant 0 : index
    %c0_20 = arith.constant 0 : index
    %19 = vector.load %arg4[%c0_18, %c0_19, %c0_20] : memref<1x8x16xbf16, #tpu.memory_space<vmem>>, vector<1x8x16xbf16>
    %20 = vector.shape_cast %19 : vector<1x8x16xbf16> to vector<8x16xbf16>
    %21 = arith.extf %20 : vector<8x16xbf16> to vector<8x16xf32>
    %c0_21 = arith.constant 0 : index
    %c0_22 = arith.constant 0 : index
    %22 = vector.load %arg5[%c0_21, %c0_22] : memref<32x1024xbf16, #tpu.memory_space<vmem>>, vector<32x1024xbf16>
    %23 = arith.extf %22 : vector<32x1024xbf16> to vector<32x1024xf32>
    %c0_23 = arith.constant 0 : index
    %c0_24 = arith.constant 0 : index
    %24 = vector.load %arg6[%c0_23, %c0_24] : memref<1024x32xbf16, #tpu.memory_space<vmem>>, vector<1024x32xbf16>
    %25 = arith.extf %24 : vector<1024x32xbf16> to vector<1024x32xf32>
    %c0_25 = arith.constant 0 : index
    %c0_26 = arith.constant 0 : index
    %26 = vector.load %arg12[%c0_25, %c0_26] : memref<64x128xf32, #tpu.memory_space<vmem>>, vector<64x128xf32>
    %c0_27 = arith.constant 0 : index
    %c0_28 = arith.constant 0 : index
    %27 = vector.load %arg13[%c0_27, %c0_28] : memref<1x128xf32, #tpu.memory_space<vmem>>, vector<1x128xf32>
    %c0_29 = arith.constant 0 : index
    %c0_30 = arith.constant 0 : index
    %28 = vector.load %arg11[%c0_29, %c0_30] : memref<1x32xf32, #tpu.memory_space<vmem>>, vector<1x32xf32>
    %c0_i32 = arith.constant 0 : i32
    %c3_i32 = arith.constant 3 : i32
    %29 = arith.addi %c0_i32, %c3_i32 : i32
    %c1_i32 = arith.constant 1 : i32
    %30 = scf.for %arg20 = %c0_i32 to %29 step %c1_i32 iter_args(%arg21 = %8) -> (vector<8x32xf32>)  : i32 {
      %cst_52 = arith.constant dense<0.000000e+00> : vector<16x32xf32>
      %52 = tpu.matmul %18, %arg21, %cst_52 {dimension_numbers = #tpu.dot_dimension_numbers<[1], [0], [0], [1], [0, 0, 1, 1], [], []>} : vector<16x8xf32>, vector<8x32xf32>, vector<16x32xf32> -> vector<16x32xf32>
      %cst_53 = arith.constant dense<0.000000e+00> : vector<16x1024xf32>
      %53 = tpu.matmul %52, %23, %cst_53 {dimension_numbers = #tpu.dot_dimension_numbers<[1], [0], [0], [1], [0, 0, 1, 1], [], []>} : vector<16x32xf32>, vector<32x1024xf32>, vector<16x1024xf32> -> vector<16x1024xf32>
      %54 = arith.mulf %53, %15 : vector<16x1024xf32>
      %cst_54 = arith.constant dense<0.000000e+00> : vector<8x1024xf32>
      %55 = tpu.matmul %21, %54, %cst_54 {dimension_numbers = #tpu.dot_dimension_numbers<[1], [0], [0], [1], [0, 0, 1, 1], [], []>} : vector<8x16xf32>, vector<16x1024xf32>, vector<8x1024xf32> -> vector<8x1024xf32>
      %cst_55 = arith.constant dense<0.000000e+00> : vector<8x32xf32>
      %56 = tpu.matmul %55, %25, %cst_55 {dimension_numbers = #tpu.dot_dimension_numbers<[1], [0], [0], [1], [0, 0, 1, 1], [], []>} : vector<8x1024xf32>, vector<1024x32xf32>, vector<8x32xf32> -> vector<8x32xf32>
      %57 = vector.broadcast %28 : vector<1x32xf32> to vector<8x32xf32>
      %58 = arith.addf %56, %57 : vector<8x32xf32>
      %cst_56 = arith.constant 0.000000e+00 : f32
      %59 = vector.broadcast %cst_56 : f32 to vector<8x32xf32>
      %60 = arith.maximumf %58, %59 : vector<8x32xf32>
      %61 = tpu.concatenate %60, %arg21 in 1 : vector<8x32xf32>, vector<8x32xf32> -> vector<8x64xf32>
      %cst_57 = arith.constant dense<0.000000e+00> : vector<8x128xf32>
      %62 = tpu.matmul %61, %26, %cst_57 {dimension_numbers = #tpu.dot_dimension_numbers<[1], [0], [0], [1], [0, 0, 1, 1], [], []>} : vector<8x64xf32>, vector<64x128xf32>, vector<8x128xf32> -> vector<8x128xf32>
      %63 = vector.broadcast %27 : vector<1x128xf32> to vector<8x128xf32>
      %64 = arith.addf %62, %63 : vector<8x128xf32>
      %65 = vector.extract_strided_slice %64 {offsets = [0, 0], sizes = [8, 64], strides = [1, 1]} : vector<8x128xf32> to vector<8x64xf32>
      %cst_58 = arith.constant 0.000000e+00 : f32
      %66 = vector.broadcast %cst_58 : f32 to vector<8x64xf32>
      %67 = arith.subf %66, %65 : vector<8x64xf32>
      %68 = math.exp %67 : vector<8x64xf32>
      %cst_59 = arith.constant 1.000000e+00 : f32
      %69 = vector.broadcast %cst_59 : f32 to vector<8x64xf32>
      %70 = arith.addf %69, %68 : vector<8x64xf32>
      %cst_60 = arith.constant 1.000000e+00 : f32
      %71 = vector.broadcast %cst_60 : f32 to vector<8x64xf32>
      %72 = arith.divf %71, %70 : vector<8x64xf32>
      %73 = vector.extract_strided_slice %72 {offsets = [0, 0], sizes = [8, 32], strides = [1, 1]} : vector<8x64xf32> to vector<8x32xf32>
      %74 = vector.extract_strided_slice %72 {offsets = [0, 32], sizes = [8, 32], strides = [1, 1]} : vector<8x64xf32> to vector<8x32xf32>
      %75 = vector.extract_strided_slice %64 {offsets = [0, 64], sizes = [8, 32], strides = [1, 1]} : vector<8x128xf32> to vector<8x32xf32>
      %76 = vector.extract_strided_slice %64 {offsets = [0, 96], sizes = [8, 32], strides = [1, 1]} : vector<8x128xf32> to vector<8x32xf32>
      %77 = arith.mulf %73, %76 : vector<8x32xf32>
      %78 = arith.addf %75, %77 : vector<8x32xf32>
      %79 = math.tanh %78 : vector<8x32xf32>
      %cst_61 = arith.constant 1.000000e+00 : f32
      %80 = vector.broadcast %cst_61 : f32 to vector<8x32xf32>
      %81 = arith.subf %80, %74 : vector<8x32xf32>
      %82 = arith.mulf %81, %79 : vector<8x32xf32>
      %83 = arith.mulf %74, %arg21 : vector<8x32xf32>
      %84 = arith.addf %82, %83 : vector<8x32xf32>
      scf.yield %84 : vector<8x32xf32>
    }
    %31 = tpu.concatenate %8, %30 in 1 : vector<8x32xf32>, vector<8x32xf32> -> vector<8x64xf32>
    %c0_31 = arith.constant 0 : index
    %c0_32 = arith.constant 0 : index
    %32 = vector.load %arg14[%c0_31, %c0_32] : memref<192x256xf32, #tpu.memory_space<vmem>>, vector<192x256xf32>
    %c0_33 = arith.constant 0 : index
    %c0_34 = arith.constant 0 : index
    %33 = vector.load %arg15[%c0_33, %c0_34] : memref<1x256xf32, #tpu.memory_space<vmem>>, vector<1x256xf32>
    %cst_35 = arith.constant 0.000000e+00 : f32
    %34 = vector.broadcast %cst_35 : f32 to vector<1x64xf32>
    %cst_36 = arith.constant 0.000000e+00 : f32
    %35 = vector.broadcast %cst_36 : f32 to vector<1x64xf32>
    %cst_37 = arith.constant 0.000000e+00 : f32
    %36 = vector.broadcast %cst_37 : f32 to vector<1x128xf32>
    %c0_i32_38 = arith.constant 0 : i32
    %c3_i32_39 = arith.constant 3 : i32
    %37 = arith.addi %c0_i32_38, %c3_i32_39 : i32
    %c1_i32_40 = arith.constant 1 : i32
    %38:3 = scf.for %arg20 = %c0_i32_38 to %37 step %c1_i32_40 iter_args(%arg21 = %34, %arg22 = %35, %arg23 = %36) -> (vector<1x64xf32>, vector<1x64xf32>, vector<1x128xf32>)  : i32 {
      %52 = tpu.concatenate %arg23, %arg21 in 1 : vector<1x128xf32>, vector<1x64xf32> -> vector<1x192xf32>
      %cst_52 = arith.constant dense<0.000000e+00> : vector<1x256xf32>
      %53 = tpu.matmul %52, %32, %cst_52 {dimension_numbers = #tpu.dot_dimension_numbers<[1], [0], [0], [1], [0, 0, 1, 1], [], []>} : vector<1x192xf32>, vector<192x256xf32>, vector<1x256xf32> -> vector<1x256xf32>
      %54 = arith.addf %53, %33 : vector<1x256xf32>
      %55 = vector.extract_strided_slice %54 {offsets = [0, 0], sizes = [1, 64], strides = [1, 1]} : vector<1x256xf32> to vector<1x64xf32>
      %cst_53 = arith.constant 0.000000e+00 : f32
      %56 = vector.broadcast %cst_53 : f32 to vector<1x64xf32>
      %57 = arith.subf %56, %55 : vector<1x64xf32>
      %58 = math.exp %57 : vector<1x64xf32>
      %cst_54 = arith.constant 1.000000e+00 : f32
      %59 = vector.broadcast %cst_54 : f32 to vector<1x64xf32>
      %60 = arith.addf %59, %58 : vector<1x64xf32>
      %cst_55 = arith.constant 1.000000e+00 : f32
      %61 = vector.broadcast %cst_55 : f32 to vector<1x64xf32>
      %62 = arith.divf %61, %60 : vector<1x64xf32>
      %63 = vector.extract_strided_slice %54 {offsets = [0, 64], sizes = [1, 64], strides = [1, 1]} : vector<1x256xf32> to vector<1x64xf32>
      %cst_56 = arith.constant 0.000000e+00 : f32
      %64 = vector.broadcast %cst_56 : f32 to vector<1x64xf32>
      %65 = arith.subf %64, %63 : vector<1x64xf32>
      %66 = math.exp %65 : vector<1x64xf32>
      %cst_57 = arith.constant 1.000000e+00 : f32
      %67 = vector.broadcast %cst_57 : f32 to vector<1x64xf32>
      %68 = arith.addf %67, %66 : vector<1x64xf32>
      %cst_58 = arith.constant 1.000000e+00 : f32
      %69 = vector.broadcast %cst_58 : f32 to vector<1x64xf32>
      %70 = arith.divf %69, %68 : vector<1x64xf32>
      %71 = vector.extract_strided_slice %54 {offsets = [0, 128], sizes = [1, 64], strides = [1, 1]} : vector<1x256xf32> to vector<1x64xf32>
      %72 = math.tanh %71 : vector<1x64xf32>
      %73 = vector.extract_strided_slice %54 {offsets = [0, 192], sizes = [1, 64], strides = [1, 1]} : vector<1x256xf32> to vector<1x64xf32>
      %cst_59 = arith.constant 0.000000e+00 : f32
      %74 = vector.broadcast %cst_59 : f32 to vector<1x64xf32>
      %75 = arith.subf %74, %73 : vector<1x64xf32>
      %76 = math.exp %75 : vector<1x64xf32>
      %cst_60 = arith.constant 1.000000e+00 : f32
      %77 = vector.broadcast %cst_60 : f32 to vector<1x64xf32>
      %78 = arith.addf %77, %76 : vector<1x64xf32>
      %cst_61 = arith.constant 1.000000e+00 : f32
      %79 = vector.broadcast %cst_61 : f32 to vector<1x64xf32>
      %80 = arith.divf %79, %78 : vector<1x64xf32>
      %81 = arith.mulf %70, %arg22 : vector<1x64xf32>
      %82 = arith.mulf %62, %72 : vector<1x64xf32>
      %83 = arith.addf %81, %82 : vector<1x64xf32>
      %84 = math.tanh %83 : vector<1x64xf32>
      %85 = arith.mulf %80, %84 : vector<1x64xf32>
      %cst_62 = arith.constant dense<0.000000e+00> : vector<1x8xf32>
      %86 = tpu.matmul %85, %31, %cst_62 {dimension_numbers = #tpu.dot_dimension_numbers<[1], [1], [0], [0], [0, 0, 1, 0], [], []>} : vector<1x64xf32>, vector<8x64xf32>, vector<1x8xf32> -> vector<1x8xf32>
      %cst_63 = arith.constant dense<0xFF800000> : vector<1xf32>
      %87 = vector.multi_reduction <maximumf>, %86, %cst_63 [1] : vector<1x8xf32> to vector<1xf32>
      %88 = vector.shape_cast %87 : vector<1xf32> to vector<1x1xf32>
      %89 = vector.broadcast %88 : vector<1x1xf32> to vector<1x8xf32>
      %90 = arith.subf %86, %89 : vector<1x8xf32>
      %91 = math.exp %90 : vector<1x8xf32>
      %cst_64 = arith.constant dense<0.000000e+00> : vector<1xf32>
      %92 = vector.multi_reduction <add>, %91, %cst_64 [1] : vector<1x8xf32> to vector<1xf32>
      %93 = vector.shape_cast %92 : vector<1xf32> to vector<1x1xf32>
      %94 = tpu.reciprocal %93 {approx = true} : vector<1x1xf32> -> vector<1x1xf32>
      %95 = vector.broadcast %94 : vector<1x1xf32> to vector<1x8xf32>
      %96 = arith.mulf %91, %95 : vector<1x8xf32>
      %cst_65 = arith.constant dense<0.000000e+00> : vector<1x64xf32>
      %97 = tpu.matmul %96, %31, %cst_65 {dimension_numbers = #tpu.dot_dimension_numbers<[1], [0], [0], [1], [0, 0, 1, 1], [], []>} : vector<1x8xf32>, vector<8x64xf32>, vector<1x64xf32> -> vector<1x64xf32>
      %98 = tpu.concatenate %85, %97 in 1 : vector<1x64xf32>, vector<1x64xf32> -> vector<1x128xf32>
      scf.yield %85, %83, %98 : vector<1x64xf32>, vector<1x64xf32>, vector<1x128xf32>
    }
    %c0_41 = arith.constant 0 : index
    %c0_42 = arith.constant 0 : index
    %39 = vector.load %arg16[%c0_41, %c0_42] : memref<128x128xf32, #tpu.memory_space<vmem>>, vector<128x128xf32>
    %cst_43 = arith.constant dense<0.000000e+00> : vector<1x128xf32>
    %40 = tpu.matmul %38#2, %39, %cst_43 {dimension_numbers = #tpu.dot_dimension_numbers<[1], [0], [0], [1], [0, 0, 1, 1], [], []>} : vector<1x128xf32>, vector<128x128xf32>, vector<1x128xf32> -> vector<1x128xf32>
    %c0_44 = arith.constant 0 : index
    %c0_45 = arith.constant 0 : index
    %41 = vector.load %arg17[%c0_44, %c0_45] : memref<1x128xf32, #tpu.memory_space<vmem>>, vector<1x128xf32>
    %42 = arith.addf %40, %41 : vector<1x128xf32>
    %c0_46 = arith.constant 0 : index
    %c0_47 = arith.constant 0 : index
    %43 = vector.load %arg18[%c0_46, %c0_47] : memref<1x1xf32, #tpu.memory_space<vmem>>, vector<1x1xf32>
    %cst_48 = arith.constant 0.000000e+00 : f32
    %44 = vector.broadcast %cst_48 : f32 to vector<1x128xf32>
    %45 = arith.cmpf ogt, %42, %44 : vector<1x128xf32>
    %46 = vector.broadcast %43 : vector<1x1xf32> to vector<1x128xf32>
    %47 = arith.mulf %46, %42 : vector<1x128xf32>
    %48 = arith.select %45, %42, %47 : vector<1x128xi1>, vector<1x128xf32>
    %c0_49 = arith.constant 0 : index
    %c0_50 = arith.constant 0 : index
    %c0_51 = arith.constant 0 : index
    %49 = vector.load %arg19[%c0_49, %c0_50, %c0_51] : memref<1x1x128xf32, #tpu.memory_space<vmem>>, vector<1x1x128xf32>
    %50 = vector.shape_cast %49 : vector<1x1x128xf32> to vector<1x128xf32>
    %51 = vector.shape_cast %48 : vector<1x128xf32> to vector<1x1x128xf32>
    tpu.vector_store %arg19[%c0_49, %c0_50, %c0_51], %51 {strides = array<i32>} : memref<1x1x128xf32, #tpu.memory_space<vmem>>, vector<1x1x128xf32>,
    return
  }
  func.func @transform_0(%arg0: i32) -> (i32, i32, i32) {
    %c0_i32 = arith.constant 0 : i32
    %c0_i32_0 = arith.constant 0 : i32
    %c0_i32_1 = arith.constant 0 : i32
    return %arg0, %c0_i32, %c0_i32_0 : i32, i32, i32
  }
  func.func @transform_1(%arg0: i32) -> (i32, i32, i32) {
    %c0_i32 = arith.constant 0 : i32
    %c0_i32_0 = arith.constant 0 : i32
    %c0_i32_1 = arith.constant 0 : i32
    return %arg0, %c0_i32, %c0_i32_0 : i32, i32, i32
  }
  func.func @transform_2(%arg0: i32) -> (i32, i32, i32) {
    %c0_i32 = arith.constant 0 : i32
    %c0_i32_0 = arith.constant 0 : i32
    %c0_i32_1 = arith.constant 0 : i32
    return %arg0, %c0_i32, %c0_i32_0 : i32, i32, i32
  }
  func.func @transform_3(%arg0: i32) -> (i32, i32, i32) {
    %c0_i32 = arith.constant 0 : i32
    %c0_i32_0 = arith.constant 0 : i32
    %c0_i32_1 = arith.constant 0 : i32
    return %arg0, %c0_i32, %c0_i32_0 : i32, i32, i32
  }
  func.func @transform_4(%arg0: i32) -> (i32, i32) {
    %c0_i32 = arith.constant 0 : i32
    %c0_i32_0 = arith.constant 0 : i32
    %c0_i32_1 = arith.constant 0 : i32
    return %c0_i32, %c0_i32_0 : i32, i32
  }
  func.func @transform_5(%arg0: i32) -> (i32, i32) {
    %c0_i32 = arith.constant 0 : i32
    %c0_i32_0 = arith.constant 0 : i32
    %c0_i32_1 = arith.constant 0 : i32
    return %c0_i32, %c0_i32_0 : i32, i32
  }
  func.func @transform_6(%arg0: i32) -> (i32, i32) {
    %c0_i32 = arith.constant 0 : i32
    %c0_i32_0 = arith.constant 0 : i32
    %c0_i32_1 = arith.constant 0 : i32
    return %c0_i32, %c0_i32_0 : i32, i32
  }
  func.func @transform_7(%arg0: i32) -> (i32, i32) {
    %c0_i32 = arith.constant 0 : i32
    %c0_i32_0 = arith.constant 0 : i32
    %c0_i32_1 = arith.constant 0 : i32
    return %c0_i32, %c0_i32_0 : i32, i32
  }
  func.func @transform_8(%arg0: i32) -> (i32, i32) {
    %c0_i32 = arith.constant 0 : i32
    %c0_i32_0 = arith.constant 0 : i32
    %c0_i32_1 = arith.constant 0 : i32
    return %c0_i32, %c0_i32_0 : i32, i32
  }
  func.func @transform_9(%arg0: i32) -> (i32, i32) {
    %c0_i32 = arith.constant 0 : i32
    %c0_i32_0 = arith.constant 0 : i32
    %c0_i32_1 = arith.constant 0 : i32
    return %c0_i32, %c0_i32_0 : i32, i32
  }
  func.func @transform_10(%arg0: i32) -> (i32, i32) {
    %c0_i32 = arith.constant 0 : i32
    %c0_i32_0 = arith.constant 0 : i32
    %c0_i32_1 = arith.constant 0 : i32
    return %c0_i32, %c0_i32_0 : i32, i32
  }
  func.func @transform_11(%arg0: i32) -> (i32, i32) {
    %c0_i32 = arith.constant 0 : i32
    %c0_i32_0 = arith.constant 0 : i32
    %c0_i32_1 = arith.constant 0 : i32
    return %c0_i32, %c0_i32_0 : i32, i32
  }
  func.func @transform_12(%arg0: i32) -> (i32, i32) {
    %c0_i32 = arith.constant 0 : i32
    %c0_i32_0 = arith.constant 0 : i32
    %c0_i32_1 = arith.constant 0 : i32
    return %c0_i32, %c0_i32_0 : i32, i32
  }
  func.func @transform_13(%arg0: i32) -> (i32, i32) {
    %c0_i32 = arith.constant 0 : i32
    %c0_i32_0 = arith.constant 0 : i32
    %c0_i32_1 = arith.constant 0 : i32
    return %c0_i32, %c0_i32_0 : i32, i32
  }
  func.func @transform_14(%arg0: i32) -> (i32, i32) {
    %c0_i32 = arith.constant 0 : i32
    %c0_i32_0 = arith.constant 0 : i32
    %c0_i32_1 = arith.constant 0 : i32
    return %c0_i32, %c0_i32_0 : i32, i32
  }
  func.func @transform_15(%arg0: i32) -> (i32, i32) {
    %c0_i32 = arith.constant 0 : i32
    %c0_i32_0 = arith.constant 0 : i32
    %c0_i32_1 = arith.constant 0 : i32
    return %c0_i32, %c0_i32_0 : i32, i32
  }
  func.func @transform_16(%arg0: i32) -> (i32, i32) {
    %c0_i32 = arith.constant 0 : i32
    %c0_i32_0 = arith.constant 0 : i32
    %c0_i32_1 = arith.constant 0 : i32
    return %c0_i32, %c0_i32_0 : i32, i32
  }
  func.func @transform_17(%arg0: i32) -> (i32, i32) {
    %c0_i32 = arith.constant 0 : i32
    %c0_i32_0 = arith.constant 0 : i32
    %c0_i32_1 = arith.constant 0 : i32
    return %c0_i32, %c0_i32_0 : i32, i32
  }
  func.func @transform_18(%arg0: i32) -> (i32, i32, i32) {
    %c0_i32 = arith.constant 0 : i32
    %c0_i32_0 = arith.constant 0 : i32
    %c0_i32_1 = arith.constant 0 : i32
    return %arg0, %c0_i32, %c0_i32_0 : i32, i32, i32
  }
}

</mosaic_0001>

<bundles_post_ra>
// kernel: tpu_custom_call.1
= control target key start
LH: loop header
LB: loop body
LE: loop exit
PB: predicated region body
PF: predicated region fallthrough
CT: control target
= control target key end

     0   :  { %s5982_s0 = inlined_call_operand.vmem [shape: f32[4,8,16], index: 0, kind: input, shape index: {}]   ;;  %s5983_s1 = inlined_call_operand.vmem [shape: f32[4,16,8], index: 1, kind: input, shape index: {}]   ;;  %s5984_s2 = inlined_call_operand.vmem [shape: bf16[4,16,8], index: 2, kind: input, shape index: {}]   ;;  %s5985_s3 = inlined_call_operand.hbm [shape: bf16[4,8,16], index: 3, kind: input, shape index: {}]   ;;  %s5986_s4 = inlined_call_operand.vmem [shape: bf16[32,1024], index: 4, kind: input, shape index: {}]   ;;  %s5987_s5 = inlined_call_operand.vmem [shape: bf16[1024,32], index: 5, kind: input, shape index: {}]   ;;  %s5988_s6 = inlined_call_operand.hbm [shape: f32[16,32], index: 6, kind: input, shape index: {}]   ;;  %s5989_s7 = inlined_call_operand.vmem [shape: f32[1,32], index: 7, kind: input, shape index: {}]   ;;  %s5990_s8 = inlined_call_operand.hbm [shape: f32[8,1024], index: 8, kind: input, shape index: {}]   ;;  %s5991_s9 = inlined_call_operand.vmem [shape: f32[1,1024], index: 9, kind: input, shape index: {}]   ;;  %s5992_s10 = inlined_call_operand.vmem [shape: f32[1,32], index: 10, kind: input, shape index: {}]   ;;  %s5993_s11 = inlined_call_operand.hbm [shape: f32[64,128], index: 11, kind: input, shape index: {}]   ;;  %s5994_s12 = inlined_call_operand.vmem [shape: f32[1,128], index: 12, kind: input, shape index: {}]   ;;  %s5995_s13 = inlined_call_operand.vmem [shape: f32[192,256], index: 13, kind: input, shape index: {}]   ;;  %s5996_s14 = inlined_call_operand.vmem [shape: f32[1,256], index: 14, kind: input, shape index: {}]   ;;  %s5997_s15 = inlined_call_operand.vmem [shape: f32[128,128], index: 15, kind: input, shape index: {}]   ;;  %s5998_s16 = inlined_call_operand.vmem [shape: f32[1,128], index: 16, kind: input, shape index: {}]   ;;  %s5999_s17 = inlined_call_operand.<no memory space> [shape: f32[1,1], index: 17, kind: input, shape index: {}]   ;;  %s6000_s18 = inlined_call_operand.hbm [shape: f32[4,1,128], index: 18, kind: output, shape index: {}]  }
   0x1   :  { %6027 = sst [smem:[#allocation87_spill]] %s5982_s0  ;;  %v23_v0 = vstv %s5999_s17 }
   0x2   :  { %6028 = sst [smem:[#allocation88_spill]] %s5983_s1  ;;  %24 = vst [vmem:[#allocation2] sm:$0x1] %v23_v0 }
   0x3   :  { %6029 = sst [smem:[#allocation89_spill]] %s5984_s2 }
   0x4   :  { %6030 = sst [smem:[#allocation90_spill]] %s5989_s7 }
   0x5   :  { %6031 = sst [smem:[#allocation91_spill]] %s5995_s13 }
   0x6   :  { %6032 = sst [smem:[#allocation92_spill]] %s5996_s14 }
   0x7   :  { %6033 = sst [smem:[#allocation93_spill]] %s5997_s15 }
   0x8   :  { %6034 = sst [smem:[#allocation94_spill]] %s5998_s16 }
   0x9   :  { %6035 = sst [smem:[#allocation95_spill]] %s6000_s18 }
   0xa   :  { %25 = vsyncpa [#allocation4], 0 }
   0xb   :  { %27 = vsyncpa [#allocation4 + $0x1], 0 }
   0xc   :  { %28 = vsyncpa [#allocation7], 0 }
   0xd   :  { %29 = vsyncpa [#allocation10], 0 }
   0xe   :  { %30 = vsyncpa [#allocation5], 0 }
   0xf   :  { %32 = vsyncpa [#allocation5 + $0x1], 0  ;;  %s4611_s29 = smov 0   ;;  %s4613_s30 = smov 0  }
  0x10   :  { %s4615_s0 = smov 0   ;;  %s4617_s19 = smov 0  }
  0x11 LB: > { %6036 = sst [smem:[#allocation16_spill]] %s4454_s29  ;;  %s4632_s17 = sadd.s32 4294967295, %s4466_s19   ;;  %s4466_s19 = sphi %s4617_s19, %s6223_s19   ;;  %s4462_s0 = sphi %s4615_s0, %s6222_s0   ;;  %s4458_s30 = sphi %s4613_s30, %s6221_s30   ;;  %s4454_s29 = sphi %s4611_s29, %s6220_s29  }
  0x12   : > { %s3180_s1 = sadd.s32 4294967294, %s4466_s19   ;;  %p136_p0 = scmp.ne.s32.totalorder %s4458_s30, %s4454_s29 }
  0x13   : > { %p6004_p1 = scmp.eq.s32.totalorder %s4632_s17, 0  ;;  %p460_p3 = scmp.eq.s32.totalorder %s3180_s1, 3 }
  0x14   : > { %p3181_p5 = scmp.ge.s32.totalorder %s4466_s19, 1  ;;  %p467_p7 = scmp.lt.s32.totalorder %s4466_s19, 5 }
  0x15   : > { %p4641_p4 = por %p6004_p1, %p136_p0  ;;  %p4646_p6 = por %p460_p3, %p136_p0 }
  0x16   : > { %p4651_p8 = pnand %p3181_p5, %p467_p7  ;;  %s4492_s2 = smov [#allocation6]  }
  0x17   : > { %s6037_s20 = scalar_select %p4641_p4, 1, 0 }
  0x18   : > { %s6038_s21 = scalar_select %p4646_p6, 1, 0 }
  0x19   : > { %s6040_s22 = scalar_select %p4651_p8, 1, 0 }
  0x1a   : > { %6039 = sst [smem:[#allocation17_spill]] %s6038_s21  ;;  %s485_s23 = sshll.u32 %s4492_s2, 4  ;;  %s4655_s23 = int_to_ptr.vmem [resolvable:$true] %s485_s23 }
  0x1b   : > { %p4106_p9 = pneg %p4651_p8  ;;  %s4493_s25 = smov [#allocation8]  }
  0x1c   : > { %s502_s26 = sshll.u32 %s4493_s25, 4  ;;  %s4494_s27 = smov [#allocation9]   ;;  %s4665_s26 = int_to_ptr.vmem [resolvable:$true] %s502_s26 }
  0x1d   : > { %p4661_p10 = pnand %p4106_p9, %p6004_p1  ;;  %s4667_s28 = sshll.u32 %s4494_s27, 4  ;;  %s519_s28 = int_to_ptr.vmem [resolvable:$true] %s4667_s28 }
  0x1e   : > { %s4254_s2 = scalar_lea.hbm %s5988_s6, 256 }
  0x1f   : > { %p4255_p11 = scmp.ne.s32.totalorder %s5988_s6, %s4254_s2  ;;  %p4677_p12 = pneg %p4661_p10 }
  0x20   : > { %p4261_p3 = scmp.lt.u32.totalorder %s4254_s2, %s5988_s6 }
  0x21   : > { %p4257_p13 = pnand %p4677_p12, %p4255_p11 }
  0x23   : > { %p4258_p0 = pneg %p4257_p13 }
  0x25   : > { %p4263_p5 = pnand %p4261_p3, %p4258_p0 }
  0x27   : > { %4266 = shalt.err (!%p4263_p5)
}
  0x28   : > { %s4267_s18 = scalar_lea.vmem %s4655_s23, 256  ;;  %p4275_p2 = scmp.lt.s32.totalorder %s4655_s23, %s4655_s23 }
  0x29   : > { %p4268_p7 = scmp.ne.s32.totalorder %s4655_s23, %s4267_s18  ;;  %p4276_p6 = scmp.lt.s32.totalorder %s4267_s18, %s4267_s18 }
  0x2b   : > { %p4270_p9 = pnand %p4268_p7, %p4677_p12  ;;  %p4277_p11 = por %p4276_p6, %p4275_p2 }
  0x2d   : > { %p4271_p1 = pneg %p4270_p9 }
  0x2f   : > { %p4278_p13 = pnand %p4277_p11, %p4271_p1 }
  0x31   : > { %4281 = shalt.err (!%p4278_p13)
}
  0x32   : > { %s4495_s29 = smov 128   ;;  %s4496_s21 = smov 8  }
  0x33   : > { %4109 = dma.hbm_to_vmem [thread:$0]  (!%p4661_p10), %s5988_s6, 256, %s4655_s23, [#allocation7], %s4495_s29, %s4495_s29, %s4496_s21  }
  0x34   : > { %s4282_s18 = scalar_lea.hbm %s5990_s8, 1024 }
  0x35   : > { %p4283_p1 = scmp.ne.s32.totalorder %s5990_s8, %s4282_s18  ;;  %p4289_p0 = scmp.lt.u32.totalorder %s4282_s18, %s5990_s8 }
  0x37   : > { %p4285_p2 = pnand %p4283_p1, %p4677_p12 }
  0x39   : > { %p4286_p6 = pneg %p4285_p2 }
  0x3b   : > { %p4291_p3 = pnand %p4289_p0, %p4286_p6 }
  0x3d   : > { %4294 = shalt.err (!%p4291_p3)
}
  0x3e   : > { %s4295_s23 = scalar_lea.vmem %s4665_s26, 1024  ;;  %p4303_p11 = scmp.lt.s32.totalorder %s4665_s26, %s4665_s26 }
  0x3f   : > { %p4296_p5 = scmp.ne.s32.totalorder %s4665_s26, %s4295_s23  ;;  %p4304_p13 = scmp.lt.s32.totalorder %s4295_s23, %s4295_s23 }
  0x41   : > { %p4298_p7 = pnand %p4296_p5, %p4677_p12  ;;  %p4305_p1 = por %p4304_p13, %p4303_p11 }
  0x43   : > { %p4299_p9 = pneg %p4298_p7 }
  0x45   : > { %p4306_p2 = pnand %p4305_p1, %p4299_p9 }
  0x47   : > { %4309 = shalt.err (!%p4306_p2)
}
  0x48   : > { %4112 = dma.hbm_to_vmem [thread:$0]  (!%p4661_p10), %s5990_s8, 1024, %s4665_s26, [#allocation7]  }
  0x49   : > { %s4310_s1 = scalar_lea.hbm %s5993_s11, 1024 }
  0x4a   : > { %p4311_p6 = scmp.ne.s32.totalorder %s5993_s11, %s4310_s1  ;;  %p4317_p5 = scmp.lt.u32.totalorder %s4310_s1, %s5993_s11 }
  0x4c   : > { %p4313_p0 = pnand %p4311_p6, %p4677_p12 }
  0x4e   : > { %p4314_p3 = pneg %p4313_p0 }
  0x50   : > { %p4319_p7 = pnand %p4317_p5, %p4314_p3 }
  0x52   : > { %4322 = shalt.err (!%p4319_p7)
}
  0x53   : > { %s4323_s23 = scalar_lea.vmem %s519_s28, 1024  ;;  %p4331_p1 = scmp.lt.s32.totalorder %s519_s28, %s519_s28 }
  0x54   : > { %p4324_p9 = scmp.ne.s32.totalorder %s519_s28, %s4323_s23  ;;  %p4332_p2 = scmp.lt.s32.totalorder %s4323_s23, %s4323_s23 }
  0x56   : > { %p4326_p11 = pnand %p4324_p9, %p4677_p12  ;;  %p4333_p4 = por %p4332_p2, %p4331_p1 }
  0x58   : > { %p4327_p13 = pneg %p4326_p11 }
  0x5a   : > { %p4334_p8 = pnand %p4333_p4, %p4327_p13 }
  0x5c   : > { %4337 = shalt.err (!%p4334_p8)
}
  0x5d   : > { %4115 = dma.hbm_to_vmem [thread:$0]  (!%p4661_p10), %s5993_s11, 1024, %s519_s28, [#allocation10], %s4495_s29, %s4495_s29, %s4496_s21  }
  0x5e   : > { %s4747_s16 = sadd.s32 1, %s4466_s19   ;;  %s123_s13 = sadd.s32 1, %s4462_s0 }
  0x5f   : > { %s120_s24 = ssub.s32 %s4466_s19, %s4747_s16  ;;  %p130_p8 = scmp.ne.s32.totalorder %s4462_s0, %s4458_s30 }
  0x60   : > { %p121_p4 = scmp.eq.s32.totalorder %s120_s24, 0  ;;  %p131_p12 = scmp.eq.s32.totalorder %s4466_s19, 0 }
  0x61   : > { %p4127_p6 = scmp.lt.s32.totalorder %s4466_s19, 4  ;;  %p6043_p3 = scmp.eq.s32.totalorder %s4632_s17, 3 }
  0x62   : > { %s4757_s14 = scalar_select %p121_p4, %s4462_s0, %s123_s13  }
  0x63   : > { %p132_p0 = por %p131_p12, %p130_p8  ;;  %p4761_p5 = por %p6043_p3, %p130_p8 }
  0x64   : > { %s573_s1 = sand.u32 1, %s4462_s0   ;;  %s3187_s2 = sshll.u32 %s4466_s19, 6 }
  0x65   : > { %s3186_s28 = sshll.u32 %s573_s1, 2  ;;  %s4770_s25 = scalar_lea.hbm %s5985_s3, %s3187_s2 }
  0x66   : > { %s577_s27 = scalar_lea.vmem [#allocation3], %s3186_s28  ;;  %p4772_p10 = pnand %p4127_p6, %p132_p0 }
  0x67   : > { %s584_s18 = sshll.u32 %s577_s27, 4  ;;  %s574_s26 = scalar_lea.sflag [#allocation4], %s573_s1  ;;  %s4776_s18 = int_to_ptr.vmem [resolvable:$true] %s584_s18 }
  0x68   : > { %s4338_s7 = scalar_lea.hbm %s4770_s25, 64  ;;  %p4340_p9 = pneg %p4772_p10 }
  0x69   : > { %p4339_p7 = scmp.ne.s32.totalorder %s4770_s25, %s4338_s7  ;;  %s4343_s2 = scalar_lea.hbm %s5985_s3, 256 }
  0x6a   : > { %p4344_p1 = scmp.lt.u32.totalorder %s4770_s25, %s5985_s3  ;;  %p4345_p2 = scmp.lt.u32.totalorder %s4343_s2, %s4338_s7 }
  0x6b   : > { %p4341_p11 = pnand %p4340_p9, %p4339_p7  ;;  %p4347_p8 = scmp.lt.u32.totalorder %s4338_s7, %s4770_s25 }
  0x6c   : > { %p4346_p4 = por %p4345_p2, %p4344_p1 }
  0x6d   : > { %p4342_p13 = pneg %p4341_p11 }
  0x6e   : > { %p4348_p12 = por %p4347_p8, %p4346_p4 }
  0x70   : > { %p4349_p6 = pnand %p4348_p12, %p4342_p13 }
  0x72   : > { %4352 = shalt.err (!%p4349_p6)
}
  0x73   : > { %s4353_s1 = scalar_lea.vmem %s4776_s18, 64  ;;  %s4497_s21 = smov [#allocation3]  }
  0x74   : > { %p4354_p0 = scmp.ne.s32.totalorder %s4776_s18, %s4353_s1  ;;  %s4358_s27 = sshll.u32 %s4497_s21, 4  ;;  %s4359_s27 = int_to_ptr.vmem [resolvable:$false] %s4358_s27 }
  0x75   : > { %s4360_s24 = scalar_lea.vmem %s4359_s27, 128  ;;  %p4361_p11 = scmp.lt.s32.totalorder %s4776_s18, %s4359_s27 }
  0x76   : > { %p4356_p3 = pnand %p4354_p0, %p4340_p9  ;;  %p4362_p1 = scmp.lt.s32.totalorder %s4360_s24, %s4353_s1 }
  0x78   : > { %p4357_p7 = pneg %p4356_p3  ;;  %p4363_p2 = por %p4362_p1, %p4361_p11 }
  0x7a   : > { %p4364_p4 = pnand %p4363_p2, %p4357_p7 }
  0x7c   : > { %4367 = shalt.err (!%p4364_p4)
}
  0x7d   : > { %4119 = dma.hbm_to_vmem [thread:$0]  (!%p4772_p10), %s4770_s25, 64, %s4776_s18, %s574_s26  }
  0x7e   : > { %p6046_p13 = scmp.ne.s32.totalorder %s6040_s22, 0 }
  0x80   : > { %593 = sbr.rel (%p6046_p13) target bundleno = 3871 (0xf1f), region = 92 }
  0x87   : > { %s4806_s7 = sand.u32 1, %s4458_s30   ;;  %p6047_p9 = scmp.ne.s32.totalorder %s6037_s20, 0 }
  0x88   : > { %s3189_s13 = sshll.u32 %s4806_s7, 2  ;;  %s596_s2 = scalar_lea.sflag [#allocation4], %s4806_s7 }
  0x89   : > { %s599_s28 = scalar_lea.vmem [#allocation3], %s3189_s13 }
  0x8a   : > { %4437 = dma.done.wait (%p6047_p9), %s596_s2, 64  }
  0x8b   : > { %4439 = vsyncadd (%p6047_p9), %s596_s2, 4294967232  ;;  %p6048_p8 = scmp.eq.s32.totalorder %s4632_s17, 0 }
  0x8d   : > { %4441 = dma.done.wait (%p6048_p8), [#allocation7], 1280   ;;  %p6049_p10 = pmov %p6048_p8 }
  0x8e   : > { %p6050_p12 = pmov %p6048_p8 }
  0x8f   : > { %4443 = vsyncadd (%p6049_p10), [#allocation7], 4294966016 }
  0x90   : > { %4445 = dma.done.wait (%p6050_p12), [#allocation10], 1024   ;;  %p6051_p6 = pmov %p6048_p8 }
  0x91   : > { %v6011_v1 = vmov 0.0   ;;  %v6009_v2 = vmov 0.0|0.0   ;;  %vm4500_vm0 = vmmov 0   ;;  %v1147_v3 = vld [vmem:[%s599_s28] sm:$0xf]  ;;  %v4841_v7 = vld [vmem:[%s5986_s4 + $0x10] sm:$0xff] }
  0x92   : > { %4447 = vsyncadd (%p6051_p6), [#allocation10], 4294966272  ;;  %899 = vmatprep.mubr.f32.mxu1 %v6011_v1  ;;  %3809 = vmatprep.subr.bf16.mxu0 %v6009_v2  ;;  %v4829_v4 = vld [vmem:[%s5986_s4] sm:$0xff]  ;;  %v4834_v5 = vld [vmem:[%s5986_s4 + $0x8] sm:$0xff]  ;;  %v4836_v6 = vunpack.c.l.bf16 %v1147_v3  ;;  %6054 = vst [vmem:[#allocation20_spill] sm:$0xff] %v4841_v7  ;;  %p677_p0 = scmp.lt.s32.totalorder %s4632_s17, 3 }
  0x93   : > { %3737 = vmatprep.mubr.msk.f32.mxu0 %vm4500_vm0, %v6011_v1  ;;  %6052 = vst [vmem:[#allocation18_spill] sm:$0xff] %v4829_v4  ;;  %6053 = vst [vmem:[#allocation19_spill] sm:$0xff] %v4834_v5  ;;  %v4846_v8 = vld [vmem:[%s5986_s4 + $0x18] sm:$0xff]  ;;  %v4851_v9 = vld [vmem:[%s5986_s4 + $0x20] sm:$0xff]  ;;  %s6112_s2 = sld [smem:[#allocation88_spill]]  ;;  %vm828_vm1 = vcmask 64512  }
  0x94   : > { %6055 = vst [vmem:[#allocation21_spill] sm:$0xff] %v4846_v8  ;;  %6056 = vst [vmem:[#allocation22_spill] sm:$0xff] %v4851_v9  ;;  %v4856_v10 = vld [vmem:[%s5986_s4 + $0x28] sm:$0xff]  ;;  %v4861_v11 = vld [vmem:[%s5986_s4 + $0x30] sm:$0xff]  ;;  %s5155_s23 = scalar_select %p677_p0, %s4632_s17, 3  ;;  %vm701_vm2 = vcmask 130048  }
  0x95   : > { %6057 = vst [vmem:[#allocation23_spill] sm:$0xff] %v4856_v10  ;;  %6058 = vst [vmem:[#allocation24_spill] sm:$0xff] %v4861_v11  ;;  %v4866_v12 = vld [vmem:[%s5986_s4 + $0x38] sm:$0xff]  ;;  %v4871_v13 = vld [vmem:[%s5986_s4 + $0x40] sm:$0xff]  ;;  %s6117_s21 = sld [smem:[#allocation89_spill]]  ;;  %s6118_s13 = sld [smem:[#allocation87_spill]] }
  0x96   : > { %v4876_v14 = vld [vmem:[%s5986_s4 + $0x48] sm:$0xff]  ;;  %v4881_v15 = vld [vmem:[%s5986_s4 + $0x50] sm:$0xff]  ;;  %v4886_v16 = vld [vmem:[%s5986_s4 + $0x58] sm:$0xff]  ;;  %s3232_s25 = sshll.u32 %s5155_s23, 4  ;;  %s3193_s18 = sshll.u32 %s5155_s23, 3 }
  0x97   : > { %v4891_v17 = vld [vmem:[%s5986_s4 + $0x60] sm:$0xff]  ;;  %v4896_v18 = vld [vmem:[%s5986_s4 + $0x68] sm:$0xff]  ;;  %v4901_v19 = vld [vmem:[%s5986_s4 + $0x70] sm:$0xff]  ;;  %s6125_s26 = sld [smem:[#allocation90_spill]]  ;;  %s676_s29 = scalar_lea.vmem [#allocation11], %s4806_s7 }
  0x98   : > { %v4906_v20 = vld [vmem:[%s5986_s4 + $0x78] sm:$0xff]  ;;  %v4911_v21 = vld [vmem:[%s5987_s5] sm:$0xff]   ;;  %v4916_v22 = vld [vmem:[%s5987_s5 + $0x8] sm:$0xff]   ;;  %s5350_s1 = smov 0  }
  0x99   : > { %v4921_v23 = vld [vmem:[%s5987_s5 + $0x10] sm:$0xff]   ;;  %v4926_v24 = vld [vmem:[%s5987_s5 + $0x18] sm:$0xff]   ;;  %v4931_v25 = vld [vmem:[%s5987_s5 + $0x20] sm:$0xff]   ;;  %s685_s28 = scalar_lea.vmem %s6112_s2, %s3232_s25 }
  0x9a   : > { %v4936_v26 = vld [vmem:[%s5987_s5 + $0x28] sm:$0xff]   ;;  %v4941_v27 = vld [vmem:[%s5987_s5 + $0x30] sm:$0xff]   ;;  %v4946_v28 = vld [vmem:[%s5987_s5 + $0x38] sm:$0xff]  }
  0x9b   : > { %6059 = vst [vmem:[#allocation25_spill] sm:$0xff] %v4936_v26  ;;  %6060 = vst [vmem:[#allocation26_spill] sm:$0xff] %v4941_v27  ;;  %v4951_v29 = vld [vmem:[%s5987_s5 + $0x40] sm:$0xff]   ;;  %v4956_v30 = vld [vmem:[%s5987_s5 + $0x48] sm:$0xff]   ;;  %s690_s27 = scalar_lea.vmem %s6117_s21, %s3193_s18  ;;  %s680_s2 = scalar_lea.vmem %s6118_s13, %s3193_s18 }
  0x9c   : > { %6061 = vst [vmem:[#allocation27_spill] sm:$0xff] %v4946_v28  ;;  %v4961_v31 = vld [vmem:[%s5987_s5 + $0x50] sm:$0xff]   ;;  %v4966_v32 = vld [vmem:[%s5987_s5 + $0x58] sm:$0xff]   ;;  %v4971_v33 = vld [vmem:[%s5987_s5 + $0x60] sm:$0xff]  }
  0x9d   : > { %v4976_v34 = vld [vmem:[%s5987_s5 + $0x68] sm:$0xff]   ;;  %v4981_v35 = vld [vmem:[%s5987_s5 + $0x70] sm:$0xff]   ;;  %v4986_v36 = vld [vmem:[%s5987_s5 + $0x78] sm:$0xff]  }
  0x9e   : > { %6062 = vst [vmem:[#allocation28_spill] sm:$0xff] %v4981_v35  ;;  %6063 = vst [vmem:[#allocation29_spill] sm:$0xff] %v4986_v36  ;;  %v4991_v37 = vld [vmem:[%s5987_s5 + $0x80] sm:$0xff]   ;;  %v4996_v38 = vld [vmem:[%s5987_s5 + $0x88] sm:$0xff]  }
  0x9f   : > { %v5001_v39 = vld [vmem:[%s5987_s5 + $0x90] sm:$0xff]   ;;  %v5006_v40 = vld [vmem:[%s5987_s5 + $0x98] sm:$0xff]   ;;  %v5011_v41 = vld [vmem:[%s5987_s5 + $0xa0] sm:$0xff]  }
  0xa0   : > { %6064 = vst [vmem:[#allocation30_spill] sm:$0xff] %v5006_v40  ;;  %6065 = vst [vmem:[#allocation31_spill] sm:$0xff] %v5011_v41  ;;  %v5016_v42 = vld [vmem:[%s5987_s5 + $0xa8] sm:$0xff]   ;;  %v5021_v43 = vld [vmem:[%s5987_s5 + $0xb0] sm:$0xff]  }
  0xa1   : > { %6066 = vst [vmem:[#allocation32_spill] sm:$0xff] %v5016_v42  ;;  %6067 = vst [vmem:[#allocation33_spill] sm:$0xff] %v5021_v43  ;;  %v5026_v44 = vld [vmem:[%s5987_s5 + $0xb8] sm:$0xff]   ;;  %v5031_v45 = vld [vmem:[%s5987_s5 + $0xc0] sm:$0xff]  }
  0xa2   : > { %6068 = vst [vmem:[#allocation34_spill] sm:$0xff] %v5026_v44  ;;  %v5036_v46 = vld [vmem:[%s5987_s5 + $0xc8] sm:$0xff]   ;;  %v5041_v47 = vld [vmem:[%s5987_s5 + $0xd0] sm:$0xff]   ;;  %v5046_v48 = vld [vmem:[%s5987_s5 + $0xd8] sm:$0xff]  }
  0xa3   : > { %6069 = vst [vmem:[#allocation35_spill] sm:$0xff] %v5046_v48  ;;  %v5051_v49 = vld [vmem:[%s5987_s5 + $0xe0] sm:$0xff]   ;;  %v5056_v50 = vld [vmem:[%s5987_s5 + $0xe8] sm:$0xff]   ;;  %v5061_v51 = vld [vmem:[%s5987_s5 + $0xf0] sm:$0xff]  }
  0xa4   : > { %6070 = vst [vmem:[#allocation36_spill] sm:$0xff] %v5051_v49  ;;  %6071 = vst [vmem:[#allocation37_spill] sm:$0xff] %v5056_v50  ;;  %v5066_v52 = vld [vmem:[%s5987_s5 + $0xf8] sm:$0xff]   ;;  %v5071_v53 = vld [vmem:[%s5987_s5 + $0x100] sm:$0xff]  }
  0xa5   : > { %6072 = vst [vmem:[#allocation38_spill] sm:$0xff] %v5061_v51  ;;  %6073 = vst [vmem:[#allocation39_spill] sm:$0xff] %v5066_v52  ;;  %v5076_v54 = vld [vmem:[%s5987_s5 + $0x108] sm:$0xff]   ;;  %v5081_v55 = vld [vmem:[%s5987_s5 + $0x110] sm:$0xff]  }
  0xa6   : > { %6074 = vst [vmem:[#allocation40_spill] sm:$0xff] %v5071_v53  ;;  %6075 = vst [vmem:[#allocation41_spill] sm:$0xff] %v5076_v54  ;;  %v5086_v56 = vld [vmem:[%s5987_s5 + $0x118] sm:$0xff]   ;;  %v5091_v57 = vld [vmem:[%s5987_s5 + $0x120] sm:$0xff]   ;;  %v6120_v54 = vmov 0.0  }
  0xa7   : > { %6076 = vst [vmem:[#allocation42_spill] sm:$0xff] %v5081_v55  ;;  %6077 = vst [vmem:[#allocation43_spill] sm:$0xff] %v5086_v56  ;;  %v5097_v58 = vld [vmem:[%s5987_s5 + $0x128] sm:$0xff]   ;;  %v5102_v59 = vld [vmem:[%s5987_s5 + $0x130] sm:$0xff]  }
  0xa8   : > { %6078 = vst [vmem:[#allocation44_spill] sm:$0xff] %v5091_v57  ;;  %6079 = vst [vmem:[#allocation45_spill] sm:$0xff] %v5097_v58  ;;  %v5107_v60 = vld [vmem:[%s5987_s5 + $0x138] sm:$0xff]   ;;  %v5112_v61 = vld [vmem:[%s5987_s5 + $0x140] sm:$0xff]  }
  0xa9   : > { %6080 = vst [vmem:[#allocation46_spill] sm:$0xff] %v5102_v59  ;;  %6081 = vst [vmem:[#allocation47_spill] sm:$0xff] %v5107_v60  ;;  %v5117_v62 = vld [vmem:[%s5987_s5 + $0x148] sm:$0xff]   ;;  %v5122_v63 = vld [vmem:[%s5987_s5 + $0x150] sm:$0xff]  }
  0xaa   : > { %6082 = vst [vmem:[#allocation48_spill] sm:$0xff] %v5112_v61  ;;  %6083 = vst [vmem:[#allocation49_spill] sm:$0xff] %v5117_v62  ;;  %v5127_v0 = vld [vmem:[%s5987_s5 + $0x158] sm:$0xff]   ;;  %v5132_v3 = vld [vmem:[%s5987_s5 + $0x160] sm:$0xff]  }
  0xab   : > { %6084 = vst [vmem:[#allocation50_spill] sm:$0xff] %v5122_v63  ;;  %6085 = vst [vmem:[#allocation51_spill] sm:$0xff] %v5127_v0  ;;  %v5137_v2 = vld [vmem:[%s5987_s5 + $0x168] sm:$0xff]   ;;  %v5142_v1 = vld [vmem:[%s5987_s5 + $0x170] sm:$0xff]  }
  0xac   : > { %6086 = vst [vmem:[#allocation52_spill] sm:$0xff] %v5132_v3  ;;  %6087 = vst [vmem:[#allocation53_spill] sm:$0xff] %v5137_v2  ;;  %v5147_v60 = vld [vmem:[%s5987_s5 + $0x178] sm:$0xff]   ;;  %v5152_v59 = vld [vmem:[%s5987_s5 + $0x180] sm:$0xff]  }
  0xad   : > { %6088 = vst [vmem:[#allocation54_spill] sm:$0xff] %v5142_v1  ;;  %6089 = vst [vmem:[#allocation55_spill] sm:$0xff] %v5147_v60  ;;  %v5160_v58 = vld [vmem:[%s5987_s5 + $0x188] sm:$0xff]   ;;  %v5165_v1 = vld [vmem:[%s5987_s5 + $0x190] sm:$0xff]  }
  0xae   : > { %6090 = vst [vmem:[#allocation56_spill] sm:$0xff] %v5152_v59  ;;  %6091 = vst [vmem:[#allocation57_spill] sm:$0xff] %v5160_v58  ;;  %v5170_v60 = vld [vmem:[%s5987_s5 + $0x198] sm:$0xff]   ;;  %v5175_v2 = vld [vmem:[%s5987_s5 + $0x1a0] sm:$0xff]  }
  0xaf   : > { %6092 = vst [vmem:[#allocation58_spill] sm:$0xff] %v5165_v1  ;;  %6093 = vst [vmem:[#allocation59_spill] sm:$0xff] %v5170_v60  ;;  %v5180_v57 = vld [vmem:[%s5987_s5 + $0x1a8] sm:$0xff]   ;;  %v5185_v3 = vld [vmem:[%s5987_s5 + $0x1b0] sm:$0xff]  }
  0xb0   : > { %6094 = vst [vmem:[#allocation60_spill] sm:$0xff] %v5175_v2  ;;  %6095 = vst [vmem:[#allocation61_spill] sm:$0xff] %v5180_v57  ;;  %v5190_v1 = vld [vmem:[%s5987_s5 + $0x1b8] sm:$0xff]   ;;  %v5195_v60 = vld [vmem:[%s5987_s5 + $0x1c0] sm:$0xff]  }
  0xb1   : > { %6096 = vst [vmem:[#allocation62_spill] sm:$0xff] %v5185_v3  ;;  %6097 = vst [vmem:[#allocation63_spill] sm:$0xff] %v5190_v1  ;;  %v5200_v2 = vld [vmem:[%s5987_s5 + $0x1c8] sm:$0xff]   ;;  %v5205_v57 = vld [vmem:[%s5987_s5 + $0x1d0] sm:$0xff]  }
  0xb2   : > { %6098 = vst [vmem:[#allocation64_spill] sm:$0xff] %v5195_v60  ;;  %6099 = vst [vmem:[#allocation65_spill] sm:$0xff] %v5200_v2  ;;  %v5210_v3 = vld [vmem:[%s5987_s5 + $0x1d8] sm:$0xff]   ;;  %v5215_v1 = vld [vmem:[%s5987_s5 + $0x1e0] sm:$0xff]  }
  0xb3   : > { %6100 = vst [vmem:[#allocation66_spill] sm:$0xff] %v5205_v57  ;;  %6101 = vst [vmem:[#allocation67_spill] sm:$0xff] %v5210_v3  ;;  %v5221_v58 = vld [vmem:[%s5987_s5 + $0x1e8] sm:$0xff]   ;;  %v5226_v57 = vld [vmem:[%s5987_s5 + $0x1f0] sm:$0xff]  }
  0xb4   : > { %6102 = vst [vmem:[#allocation68_spill] sm:$0xff] %v5215_v1  ;;  %6103 = vst [vmem:[#allocation69_spill] sm:$0xff] %v5221_v58  ;;  %v5231_v3 = vld [vmem:[%s5987_s5 + $0x1f8] sm:$0xff]   ;;  %v5235_v2 = vld [vmem:[#allocation9 + $0x8] sm:$0xff] }
  0xb5   : > { %6104 = vst [vmem:[#allocation70_spill] sm:$0xff] %v5226_v57  ;;  %6105 = vst [vmem:[#allocation71_spill] sm:$0xff] %v5231_v3  ;;  %v5233_v56 = vld [vmem:[#allocation9] sm:$0xff]  ;;  %v5237_v1 = vld [vmem:[#allocation9 + $0x10] sm:$0xff] }
  0xb6   : > { %6106 = vst [vmem:[#allocation72_spill] sm:$0xff] %v5233_v56  ;;  %6107 = vst [vmem:[#allocation73_spill] sm:$0xff] %v5235_v2  ;;  %v5239_v0 = vld [vmem:[#allocation9 + $0x18] sm:$0xff]  ;;  %v5241_v59 = vld [vmem:[#allocation9 + $0x20] sm:$0xff] }
  0xb7   : > { %6108 = vst [vmem:[#allocation74_spill] sm:$0xff] %v5237_v1  ;;  %6109 = vst [vmem:[#allocation75_spill] sm:$0xff] %v5239_v0  ;;  %v5243_v58 = vld [vmem:[#allocation9 + $0x28] sm:$0xff]  ;;  %v5248_v57 = vld [vmem:[#allocation9 + $0x30] sm:$0xff] }
  0xb8   : > { %6110 = vst [vmem:[#allocation76_spill] sm:$0xff] %v5241_v59  ;;  %6111 = vst [vmem:[#allocation77_spill] sm:$0xff] %v5243_v58  ;;  %v5250_v55 = vld [vmem:[#allocation9 + $0x38] sm:$0xff]  ;;  %v5255_v2 = vld [vmem:[%s5994_s12] ss:$0 sm:$0xff] }
  0xb9   : > { %6113 = vst [vmem:[#allocation78_spill] sm:$0xff] %v5248_v57  ;;  %6114 = vst [vmem:[#allocation79_spill] sm:$0xff] %v5250_v55  ;;  %v5261_v59 = vld [vmem:[%s5992_s10] ss:$0 sm:$0xff]  ;;  %v779_v58 = vld [vmem:[#allocation8 + $0x8] sm:$0xff] }
  0xba   : > { %6115 = vst [vmem:[#allocation80_spill] sm:$0xff] %v5255_v2  ;;  %6116 = vst [vmem:[#allocation81_spill] sm:$0xff] %v5261_v59  ;;  %v778_v0 = vld [vmem:[#allocation8] sm:$0xff]  ;;  %835 = vmatprep.subr.mxu1 %v779_v58  ;;  %v781_v57 = vld [vmem:[#allocation8 + $0x18] sm:$0xff] }
  0xbb   : > { %v776_v55 = vld [vmem:[%s685_s28] sm:$0xff]  ;;  %v692_v1 = vld [vmem:[#allocation6] sm:$0xff]  ;;  %836 = vmatpush1.msra.mxu1 %v778_v0  ;;  %v693_v56 = vld [vmem:[#allocation6 + $0x8] sm:$0xff] }
  0xbc   : > { %v780_v2 = vld [vmem:[#allocation8 + $0x10] sm:$0xff]  ;;  %3200 = vmatmul.mubr.msk.f32.vlgmr.msra.gmra.mrb[0].mxu1 %vm828_vm1, %v776_v55  ;;  %4072 = vmatprep.subr.mxu1 %v781_v57  ;;  %v3810_v59 = vpack.c.bf16 %v693_v56, %v692_v1  ;;  %v5270_v3 = vld [vmem:[%s690_s27] sm:$0xff]   ;;  %v785_v60 = vld [vmem:[#allocation8 + $0x38] sm:$0xff] }
  0xbd   : > { %6119 = vst [vmem:[#allocation82_spill] sm:$0xff] %v5270_v3  ;;  %v783_v63 = vld [vmem:[#allocation8 + $0x28] sm:$0xff]  ;;  %4073 = vmatpush1.msra.mxu1 %v780_v2  ;;  %905 = vmatprep.mubr.f32.mxu1 %v6120_v54  ;;  %v782_v1 = vld [vmem:[#allocation8 + $0x20] sm:$0xff]  ;;  %v784_v56 = vld [vmem:[#allocation8 + $0x30] sm:$0xff] }
  0xbe   : > { %v777_v62 = vld [vmem:[%s685_s28 + $0x8] sm:$0xff]  ;;  %3811 = vmatpush3.bf16.msra.mxu0 %v3810_v59  ;;  %v691_v53 = vld [vmem:[%s680_s2] sm:$0xff]  ;;  %989 = vmatprep.subr.mxu1 %v783_v63 }
  0xbf   : > { %912 = vmatprep.subr.mxu0 %v781_v57  ;;  %v786_v59 = vld [vmem:[%s5991_s9] sm:$0xff] }
  0xc0   : > { %3201 = vmatmul.mubr.msk.f32.gmra.mrb[2].mxu1 %vm828_vm1, %v777_v62  ;;  %v3198_v58 = vld [vmem:[%s6125_s26] ss:$0 sm:$0xff] }
  0xc1   : > { %3738 = vmatmul.mubr.msk.f32.vlgmr.msra.gmra.mrb[0].mxu0 %vm701_vm2, %v691_v53  ;;  %982 = vmatprep.mubr.f32.mxu1 %v6120_v54 }
  0xc2   : > { %913 = vmatpush1.msra.mxu0 %v780_v2  ;;  %976 = vmatprep.mubr.f32.mxu0 %v6120_v54  ;;  %v788_v2 = vlaneseq }
  0xc3   : > { %1066 = vmatprep.subr.mxu0 %v785_v60 }
  0xc4   : > { %3203 = vmatmul.mubr.msk.f32.vlgmr.msra.gmra.mrb[4].mxu1 %vm828_vm1, %v777_v62  ;;  %v5289_v53 = vshrl.u32 %v788_v2, 7 }
  0xc5   : > { %3202 = vmatmul.mubr.msk.f32.vlgmr.msra.gmra.mrb[2].mxu0 %vm828_vm1, %v776_v55  ;;  %990 = vmatpush1.msra.mxu1 %v782_v1 }
  0xc6   : > { %1067 = vmatpush1.msra.mxu0 %v784_v56  ;;  %1053 = vmatprep.mubr.f32.mxu1 %v6120_v54  ;;  %6121 = vst [vmem:[#allocation83_spill] sm:$0xff] %v5289_v53  ;;  %v5292_v57 = vsub.s32 0, %v5289_v53  ;;  %v798_v56 = vsub.s32 2, %v5289_v53  ;;  %v802_v2 = vsub.s32 3, %v5289_v53  ;;  %v810_v28 = vsub.s32 5, %v5289_v53 }
  0xc7   : > { %1130 = vmatprep.mubr.f32.mxu0 %v6120_v54  ;;  %v818_v41 = vsub.s32 7, %v5289_v53 }
  0xc8   : > { %3204 = vmatmul.mubr.msk.f32.vlgmr.msra.gmra.mrb[6].mxu1 %vm828_vm1, %v776_v55  ;;  %6122 = vst [vmem:[#allocation84_spill] sm:$0xff] %v5292_v57  ;;  %v791_v60 = vrot.slane %v786_v59, %v5292_v57  ;;  %v803_v51 = vrot.slane %v786_v59, %v802_v2 }
  0xc9   : > { %3206 = vmatmul.mubr.msk.f32.vlgmr.msra.gmra.mrb[4].mxu0 %vm828_vm1, %v776_v55  ;;  %1059 = vmatprep.mubr.f32.mxu1 %v6120_v54  ;;  %v6014_v55 = vsub.s32 1, %v5289_v53  ;;  %v819_v40 = vrot.slane %v786_v59, %v818_v41 }
  0xca   : > { %1136 = vmatprep.mubr.f32.mxu0 %v6120_v54 }
  0xcb   : > { %v795_v54 = vrot.slane %v786_v59, %v6014_v55  ;;  %v799_v55 = vrot.slane %v786_v59, %v798_v56 }
  0xcc   : > { %3205 = vmatmul.mubr.msk.f32.gmra.mrb[8].mxu1 %vm828_vm1, %v777_v62 }
  0xcd   : > { %3207 = vmatmul.mubr.msk.f32.gmra.mrb[6].mxu0 %vm828_vm1, %v777_v62 }
 0x18f   : > { %v901_v63 = vpop.f32.mrb[0].mxu1 }
 0x190   : > { %v5301_v1 = vadd.f32 %v901_v63, %v791_v60  ;;  %v903_v62 = vpop.f32.mrb[1].mxu1  ;;  %v806_v63 = vsub.s32 4, %v5289_v53 }
 0x191   : > { %v5305_v0 = vadd.f32 %v903_v62, %v795_v54  ;;  %v814_v62 = vsub.s32 6, %v5289_v53 }
 0x192   : > { %6123 = vst [vmem:[#allocation85_spill] sm:$0xff] %v5301_v1  ;;  %v807_v2 = vrot.slane %v786_v59, %v806_v63 }
 0x193   : > { %6124 = vst [vmem:[#allocation86_spill] sm:$0xff] %v5305_v0  ;;  %v907_v44 = vpop.f32.mrb[2].mxu1 }
 0x194   : > { %v771_v52 = vpop.f32.mrb[0].mxu0  ;;  %v5310_v57 = vadd.f32 %v907_v44, %v791_v60  ;;  %v909_v43 = vpop.f32.mrb[3].mxu1 }
 0x195   : > { %v5313_v42 = vadd.f32 %v3198_v58, %v771_v52  ;;  %v3739_v61 = vpop.f32.mrb[1].mxu0  ;;  %v5315_v50 = vadd.f32 %v909_v43, %v795_v54  ;;  %v815_v43 = vrot.slane %v786_v59, %v814_v62  ;;  %v811_v58 = vrot.slane %v786_v59, %v810_v28 }
 0x197   : > { %v984_v44 = vpop.f32.mrb[4].mxu1 }
 0x198   : > { %v978_v60 = vpop.f32.mrb[2].mxu0  ;;  %v5321_v49 = vadd.f32 %v984_v44, %v799_v55  ;;  %v986_v56 = vpop.f32.mrb[5].mxu1 }
 0x199   : > { %v5323_v27 = vadd.f32 %v978_v60, %v799_v55  ;;  %v980_v52 = vpop.f32.mrb[3].mxu0  ;;  %v5325_v61 = vadd.f32 %v986_v56, %v803_v51 }
 0x19a   : > { %v5327_v54 = vadd.f32 %v980_v52, %v803_v51 }
 0x19b   : > { %v1055_v35 = vpop.f32.mrb[6].mxu1 }
 0x19c   : > { %v5329_v53 = vadd.f32 %v1055_v35, %v807_v2  ;;  %v1132_v36 = vpop.f32.mrb[4].mxu0  ;;  %v1057_v48 = vpop.f32.mrb[7].mxu1 }
 0x19d   : > { %v5331_v44 = vadd.f32 %v1132_v36, %v815_v43  ;;  %v5333_v26 = vadd.f32 %v1057_v48, %v811_v58  ;;  %v1134_v55 = vpop.f32.mrb[5].mxu0  ;;  %v6126_v36 = vmax.f32 %v5313_v42, 0.0  }
 0x19e   : > { %v5335_v63 = vadd.f32 %v1134_v55, %v819_v40 }
 0x19f   : > { %v1061_v60 = vpop.f32.mrb[8].mxu1 }
 0x1a0   : > { %v5337_v56 = vadd.f32 %v1061_v60, %v807_v2  ;;  %v1138_v28 = vpop.f32.mrb[6].mxu0  ;;  %v1063_v51 = vpop.f32.mrb[9].mxu1 }
 0x1a1   : > { %v5339_v62 = vadd.f32 %v1138_v28, %v815_v43  ;;  %v5341_v41 = vadd.f32 %v1063_v51, %v811_v58  ;;  %v1140_v35 = vpop.f32.mrb[7].mxu0 }
 0x1a2   : > { %v5343_v59 = vadd.f32 %v1140_v35, %v819_v40 }
 0x1a3 LB: >> { %v6127_v11 = vld [vmem:[#allocation24_spill] sm:$0xff]  ;;  %v6128_v10 = vld [vmem:[#allocation23_spill] sm:$0xff]  ;;  %v6129_v9 = vld [vmem:[#allocation22_spill] sm:$0xff]  ;;  %v4084_v58 = vcombine.high %v4881_v15, %v4901_v19  ;;  %3740 = vmatprep.subr.mxu0 %v4470_v36  ;;  %v4076_v55 = vcombine.high %v4871_v13, %v4891_v17  ;;  %v4085_v60 = vcombine.low %v4881_v15, %v4901_v19  ;;  %v4077_v51 = vcombine.low %v4871_v13, %v4891_v17  ;;  %s4502_s25 = smov 32   ;;  %s4505_s21 = smov 64   ;;  %s4474_s1 = sphi %s5350_s1, %s1468_s1   ;;  %v4470_v36 = vphi %v6126_v36, %v6197_v36  }
 0x1a4   : >> { %v6130_v8 = vld [vmem:[#allocation21_spill] sm:$0xff]  ;;  %v6131_v7 = vld [vmem:[#allocation20_spill] sm:$0xff]  ;;  %v6132_v5 = vld [vmem:[#allocation19_spill] sm:$0xff]  ;;  %3741 = vmatpush3.msra.mxu0 %v4470_v36  ;;  %vm1551_vm3 = vcmask 261120   ;;  %2457 = vrot.lane.b32.xlu0 %v4470_v36, %s4502_s25  ;;  %vm4504_vm4 = vmmov 0   ;;  %vm2467_vm5 = vcmask 523264  }
 0x1a5   : >> { %v6133_v4 = vld [vmem:[#allocation18_spill] sm:$0xff]  ;;  %v4082_v2 = vcombine.high %v6131_v7, %v6127_v11  ;;  %v4083_v43 = vcombine.low %v6131_v7, %v6127_v11  ;;  %v4078_v35 = vcombine.high %v6132_v5, %v6128_v10  ;;  %v6137_v1 = vld [vmem:[#allocation85_spill] sm:$0xff]  ;;  %s4506_s27 = smov 96   ;;  %s1468_s1 = sadd.s32 1, %s4474_s1  }
 0x1a6   : >> { %v6134_v3 = vld [vmem:[#allocation82_spill] sm:$0xff]  ;;  %v4074_v40 = vcombine.high %v6133_v4, %v6129_v9  ;;  %v4075_v52 = vcombine.low %v6133_v4, %v6129_v9  ;;  %p1465_p3 = scmp.ge.s32.totalorder %s1468_s1, 3  }
 0x1a7   : >> { %v6135_v48 = vunpack.c.l.bf16 %v6134_v3  ;;  %3829 = vmatprep.subr.bf16.mxu1 %v4082_v2  ;;  %v6136_v28 = vunpack.c.h.bf16 %v6134_v3  ;;  %v6138_v0 = vld [vmem:[#allocation86_spill] sm:$0xff]  ;;  %s6198_s13 = sld [smem:[#allocation91_spill]] (%p1465_p3)  ;;  %s4507_s18 = smov (%p1465_p3), 32  }
 0x1a8   : >> { %3831 = vmatpush1.bf16.msra.mxu1 %v4083_v43  ;;  %3813 = vmatprep.subr.bf16.mxu0 %v4074_v40  ;;  %v4079_v40 = vcombine.low %v6132_v5, %v6128_v10  ;;  %v6161_v36 = vld [vmem:[#allocation42_spill] sm:$0xff]  ;;  %s6202_s28 = sld [smem:[#allocation92_spill]] (%p1465_p3)  ;;  %s5783_s20 = smov (%p1465_p3), 0  }
 0x1a9   : >> { %3742 = vmatprep.mubr.msk.f32.mxu0 %vm828_vm1, %v6135_v48  ;;  %3833 = vmatprep.subr.bf16.mxu1 %v4084_v58  ;;  %v6020_v48 = vmov 0.0   ;;  %v4081_v58 = vcombine.low %v4876_v14, %v4896_v18 }
 0x1aa   : >> { %3743 = vmatmul.mubr.msk.f32.vlgmr.msra.gmra.mrb[0].mxu0 %vm828_vm1, %v6136_v28  ;;  %1776 = vmatprep.mubr.f32.mxu1 %v6020_v48  ;;  %v4088_v28 = vcombine.high %v4886_v16, %v4906_v20 }
 0x1ab   : >> { %3815 = vmatpush1.bf16.msra.mxu0 %v4075_v52  ;;  %1622 = vmatprep.mubr.f32.mxu0 %v6020_v48  ;;  %v4080_v52 = vcombine.high %v4876_v14, %v4896_v18 }
 0x1ac   : >> { %3817 = vmatprep.subr.bf16.mxu0 %v4076_v55  ;;  %3835 = vmatpush1.bf16.msra.mxu1 %v4085_v60  ;;  %v4086_v55 = vcombine.high %v6130_v8, %v4866_v12  ;;  %v4087_v60 = vcombine.low %v6130_v8, %v4866_v12 }
 0x1ad   : > { %v5550_v12 = vld [vmem:[%s6198_s13 + $0x20] sm:$0xff] (%p1465_p3)  ;;  %v5555_v13 = vld [vmem:[%s6198_s13 + $0x28] sm:$0xff] (%p1465_p3)  ;;  %v5560_v14 = vld [vmem:[%s6198_s13 + $0x30] sm:$0xff] (%p1465_p3) }
 0x1ae   : > { %v5565_v15 = vld [vmem:[%s6198_s13 + $0x38] sm:$0xff] (%p1465_p3)  ;;  %v5575_v17 = vld [vmem:[%s6198_s13 + $0x48] sm:$0xff] (%p1465_p3)  ;;  %v5580_v18 = vld [vmem:[%s6198_s13 + $0x50] sm:$0xff] (%p1465_p3) }
 0x1af   : >> { %3819 = vmatpush1.bf16.msra.mxu0 %v4077_v51  ;;  %v4089_v51 = vcombine.low %v4886_v16, %v4906_v20  ;;  %v5570_v16 = vld [vmem:[%s6198_s13 + $0x40] sm:$0xff] (%p1465_p3)  ;;  %v5585_v19 = vld [vmem:[%s6198_s13 + $0x58] sm:$0xff] (%p1465_p3) }
 0x1b0   : >> { %3821 = vmatprep.subr.bf16.mxu0 %v4078_v35  ;;  %v5590_v20 = vld [vmem:[%s6198_s13 + $0x60] sm:$0xff] (%p1465_p3) }
 0x27d   : >> { %v3744_v2 = vpop.f32.mrb[0].mxu0 }
 0x27e   : >> { %v1542_v43 = vpop.f32.mrb[1].mxu0 }
 0x27f   : >> { %3210 = vmatmul.mubr.msk.f32.vlgmr.msra.gmra.mrb[2].mxu0 %vm1551_vm3, %v1542_v43  ;;  %3214 = vmatmul.mubr.msk.f32.vlgmr.msra.gmra.mrb[0].mxu1 %vm1551_vm3, %v1542_v43 }
 0x280   : >> { %3823 = vmatpush1.bf16.msra.mxu0 %v4079_v40  ;;  %1628 = vmatprep.mubr.f32.mxu0 %v6020_v48 }
 0x281   : >> { %1782 = vmatprep.mubr.f32.mxu1 %v6020_v48  ;;  %3825 = vmatprep.subr.bf16.mxu0 %v4080_v52 }
 0x283   : >> { %3211 = vmatmul.mubr.msk.f32.gmra.mrb[4].mxu0 %vm1551_vm3, %v3744_v2  ;;  %3215 = vmatmul.mubr.msk.f32.gmra.mrb[2].mxu1 %vm1551_vm3, %v3744_v2 }
 0x284   : >> { %3827 = vmatpush1.bf16.msra.mxu0 %v4081_v58  ;;  %1699 = vmatprep.mubr.f32.mxu0 %v6020_v48 }
 0x285   : >> { %3837 = vmatprep.subr.bf16.mxu0 %v4086_v55  ;;  %1949 = vmatprep.mubr.f32.mxu1 %v6020_v48 }
 0x287   : >> { %3212 = vmatmul.mubr.msk.f32.vlgmr.msra.gmra.mrb[6].mxu0 %vm1551_vm3, %v1542_v43 }
 0x288   : >> { %3839 = vmatpush1.bf16.msra.mxu0 %v4087_v60  ;;  %1705 = vmatprep.mubr.f32.mxu0 %v6020_v48 }
 0x289   : >> { %3841 = vmatprep.subr.bf16.mxu0 %v4088_v28 }
 0x28b   : >> { %3213 = vmatmul.mubr.msk.f32.gmra.mrb[8].mxu0 %vm1551_vm3, %v3744_v2 }
 0x28c   : >> { %3843 = vmatpush1.bf16.msra.mxu0 %v4089_v51  ;;  %1853 = vmatprep.mubr.f32.mxu0 %v6020_v48 }
 0x28f   : >> { %3216 = vmatmul.mubr.msk.f32.vlgmr.msra.gmra.mrb[10].mxu0 %vm1551_vm3, %v1542_v43 }
 0x290   : >> { %1859 = vmatprep.mubr.f32.mxu0 %v6020_v48 }
 0x293   : >> { %3217 = vmatmul.mubr.msk.f32.gmra.mrb[12].mxu0 %vm1551_vm3, %v3744_v2 }
 0x294   : >> { %2020 = vmatprep.mubr.f32.mxu0 %v6020_v48 }
 0x352   : >> { %v1624_v35 = vpop.f32.mrb[2].mxu0  ;;  %v1778_v40 = vpop.f32.mrb[0].mxu1 }
 0x353   : >> { %v1626_v52 = vpop.f32.mrb[3].mxu0  ;;  %v1780_v58 = vpop.f32.mrb[1].mxu1  ;;  %v1866_v28 = vmul.f32 %v1624_v35, %v6137_v1  ;;  %v1870_v51 = vmul.f32 %v1778_v40, %v5329_v53  ;;  %v5700_v53 = vld [vmem:[%s6198_s13 + $0x110] sm:$0xff] (%p1465_p3) }
 0x354   : >> { %v1867_v2 = vmul.f32 %v1626_v52, %v6138_v0  ;;  %v1871_v48 = vmul.f32 %v1780_v58, %v5333_v26  ;;  %v5620_v26 = vld [vmem:[%s6198_s13 + $0x90] sm:$0xff] (%p1465_p3) }
 0x356   : >> { %v1630_v55 = vpop.f32.mrb[4].mxu0  ;;  %v1784_v60 = vpop.f32.mrb[2].mxu1 }
 0x357   : >> { %v1874_v3 = vmul.f32 %v1630_v55, %v5310_v57  ;;  %v1878_v43 = vmul.f32 %v1784_v60, %v5337_v56  ;;  %v1632_v4 = vpop.f32.mrb[5].mxu0  ;;  %v1786_v5 = vpop.f32.mrb[3].mxu1  ;;  %v5705_v57 = vld [vmem:[%s6198_s13 + $0x118] sm:$0xff] (%p1465_p3)  ;;  %v5730_v56 = vld [vmem:[%s6198_s13 + $0x140] sm:$0xff] (%p1465_p3) }
 0x358   : >> { %v1875_v7 = vmul.f32 %v1632_v4, %v5315_v50  ;;  %v1879_v8 = vmul.f32 %v1786_v5, %v5341_v41  ;;  %v5695_v50 = vld [vmem:[%s6198_s13 + $0x108] sm:$0xff] (%p1465_p3)  ;;  %v5740_v41 = vld [vmem:[%s6198_s13 + $0x150] sm:$0xff] (%p1465_p3) }
 0x359   : >> { %v3846_v9 = vpack.c.bf16 %v1874_v3, %v1866_v28  ;;  %v3854_v10 = vpack.c.bf16 %v1878_v43, %v1870_v51 }
 0x35a   : >> { %v3844_v11 = vpack.c.bf16 %v1875_v7, %v1867_v2  ;;  %v3852_v35 = vpack.c.bf16 %v1879_v8, %v1871_v48  ;;  %v1701_v1 = vpop.f32.mrb[6].mxu0  ;;  %v6139_v7 = vmov 0.0   ;;  %v6140_v2 = vld [vmem:[#allocation25_spill] sm:$0xff] }
 0x35b   : >> { %v1703_v40 = vpop.f32.mrb[7].mxu0  ;;  %v1868_v60 = vmul.f32 %v1701_v1, %v5323_v27  ;;  %v5625_v27 = vld [vmem:[%s6198_s13 + $0x98] sm:$0xff] (%p1465_p3) }
 0x35c   : >> { %3845 = vmatprep.subr.bf16.mxu1 %v3844_v11  ;;  %v1869_v58 = vmul.f32 %v1703_v40, %v5327_v54  ;;  %v6142_v40 = vld [vmem:[#allocation28_spill] sm:$0xff] }
 0x35d   : >> { %3847 = vmatpush1.bf16.msra.mxu1 %v3846_v9  ;;  %v5715_v54 = vld [vmem:[%s6198_s13 + $0x128] sm:$0xff] (%p1465_p3) }
 0x35e   : >> { %v1707_v55 = vpop.f32.mrb[8].mxu0  ;;  %3853 = vmatprep.subr.bf16.mxu1 %v3852_v35  ;;  %v6141_v35 = vld [vmem:[#allocation35_spill] sm:$0xff] }
 0x35f   : >> { %v1876_v52 = vmul.f32 %v1707_v55, %v5321_v49  ;;  %v1709_v0 = vpop.f32.mrb[9].mxu0  ;;  %v6143_v55 = vld [vmem:[#allocation30_spill] sm:$0xff] }
 0x360   : >> { %v1877_v4 = vmul.f32 %v1709_v0, %v5325_v61  ;;  %3218 = vmatmul.mubr.msk.f32.vlgmr.msra.gmra.mrb[4].mxu1 %vm701_vm2, %v4836_v6  ;;  %v5690_v49 = vld [vmem:[%s6198_s13 + $0x100] sm:$0xff] (%p1465_p3) }
 0x361   : >> { %v3850_v5 = vpack.c.bf16 %v1876_v52, %v1868_v60  ;;  %3855 = vmatpush1.bf16.msra.mxu1 %v3854_v10  ;;  %2091 = vmatprep.mubr.f32.mxu1 %v6139_v7  ;;  %v6144_v60 = vld [vmem:[#allocation26_spill] sm:$0xff]  ;;  %v6145_v52 = vld [vmem:[#allocation36_spill] sm:$0xff] }
 0x362   : >> { %v3848_v8 = vpack.c.bf16 %v1877_v4, %v1869_v58  ;;  %v1855_v9 = vpop.f32.mrb[10].mxu0  ;;  %3861 = vmatprep.subr.bf16.mxu1 %v4951_v29  ;;  %v6146_v58 = vld [vmem:[#allocation29_spill] sm:$0xff]  ;;  %v6147_v4 = vld [vmem:[#allocation31_spill] sm:$0xff] }
 0x363   : >> { %v1857_v11 = vpop.f32.mrb[11].mxu0  ;;  %v1872_v0 = vmul.f32 %v1855_v9, %v5331_v44  ;;  %v6150_v9 = vld [vmem:[#allocation48_spill] sm:$0xff]  ;;  %v5630_v29 = vld [vmem:[%s6198_s13 + $0xa0] sm:$0xff] (%p1465_p3) }
 0x364   : >> { %3849 = vmatprep.subr.bf16.mxu0 %v3848_v8  ;;  %3220 = vmatmul.mubr.msk.f32.vlgmr.msra.gmra.mrb[6].mxu1 %vm701_vm2, %v4836_v6  ;;  %v1873_v48 = vmul.f32 %v1857_v11, %v5335_v63  ;;  %v6149_v8 = vld [vmem:[#allocation37_spill] sm:$0xff]  ;;  %v6151_v11 = vld [vmem:[#allocation32_spill] sm:$0xff]  ;;  %v5710_v61 = vld [vmem:[%s6198_s13 + $0x120] sm:$0xff] (%p1465_p3) }
 0x365   : >> { %3851 = vmatpush1.bf16.msra.mxu0 %v3850_v5  ;;  %3863 = vmatpush3.bf16.msra.mxu1 %v4911_v21  ;;  %v6148_v5 = vld [vmem:[#allocation27_spill] sm:$0xff]  ;;  %v5720_v44 = vld [vmem:[%s6198_s13 + $0x130] sm:$0xff] (%p1465_p3)  ;;  %v5725_v63 = vld [vmem:[%s6198_s13 + $0x138] sm:$0xff] (%p1465_p3) }
 0x366   : >> { %v1861_v3 = vpop.f32.mrb[12].mxu0  ;;  %3865 = vmatprep.subr.bf16.mxu1 %v4956_v30  ;;  %v5595_v21 = vld [vmem:[%s6198_s13 + $0x68] sm:$0xff] (%p1465_p3) }
 0x367   : >> { %v1880_v10 = vmul.f32 %v1861_v3, %v5339_v62  ;;  %v1863_v1 = vpop.f32.mrb[13].mxu0  ;;  %v6152_v3 = vld [vmem:[#allocation38_spill] sm:$0xff]  ;;  %v5635_v30 = vld [vmem:[%s6198_s13 + $0xa8] sm:$0xff] (%p1465_p3) }
 0x368   : >> { %v1881_v28 = vmul.f32 %v1863_v1, %v5343_v59  ;;  %3219 = vmatmul.mubr.msk.f32.vlgmr.msra.gmra.mrb[14].mxu0 %vm701_vm2, %v4836_v6  ;;  %v6155_v1 = vld [vmem:[#allocation34_spill] sm:$0xff]  ;;  %v5735_v62 = vld [vmem:[%s6198_s13 + $0x148] sm:$0xff] (%p1465_p3) }
 0x369   : >> { %v3858_v51 = vpack.c.bf16 %v1880_v10, %v1872_v0  ;;  %2162 = vmatprep.mubr.f32.mxu0 %v6139_v7  ;;  %3867 = vmatpush3.bf16.msra.mxu1 %v4916_v22  ;;  %v6153_v0 = vld [vmem:[#allocation33_spill] sm:$0xff]  ;;  %v6154_v10 = vld [vmem:[#allocation39_spill] sm:$0xff] }
 0x36a   : >> { %v3856_v43 = vpack.c.bf16 %v1881_v28, %v1873_v48  ;;  %3869 = vmatprep.subr.bf16.mxu1 %v4961_v31  ;;  %v6156_v48 = vld [vmem:[#allocation64_spill] sm:$0xff]  ;;  %v5745_v59 = vld [vmem:[%s6198_s13 + $0x158] sm:$0xff] (%p1465_p3) }
 0x36b   : > { %v5600_v22 = vld [vmem:[%s6198_s13 + $0x70] sm:$0xff] (%p1465_p3) }
 0x36c   : >> { %3857 = vmatprep.subr.bf16.mxu0 %v3856_v43  ;;  %v6157_v43 = vld [vmem:[#allocation40_spill] sm:$0xff] }
 0x36d   : >> { %3859 = vmatpush1.bf16.msra.mxu0 %v3858_v51  ;;  %3871 = vmatpush3.bf16.msra.mxu1 %v4921_v23  ;;  %v5605_v23 = vld [vmem:[%s6198_s13 + $0x78] sm:$0xff] (%p1465_p3)  ;;  %v5640_v31 = vld [vmem:[%s6198_s13 + $0xb0] sm:$0xff] (%p1465_p3) }
 0x36e   : >> { %3893 = vmatprep.subr.bf16.mxu0 %v5031_v45  ;;  %3873 = vmatprep.subr.bf16.mxu1 %v4966_v32  ;;  %v5645_v32 = vld [vmem:[%s6198_s13 + $0xb8] sm:$0xff] (%p1465_p3)  ;;  %v5675_v45 = vld [vmem:[%s6198_s13 + $0xe8] sm:$0xff] (%p1465_p3) }
 0x370   : >> { %3221 = vmatmul.mubr.msk.f32.vlgmr.msra.gmra.mrb[16].mxu0 %vm701_vm2, %v4836_v6  ;;  %v5545_v6 = vld [vmem:[%s6198_s13 + $0x18] sm:$0xff] (%p1465_p3) }
 0x371   : >> { %3895 = vmatpush3.bf16.msra.mxu0 %v4991_v37  ;;  %3875 = vmatpush3.bf16.msra.mxu1 %v4926_v24  ;;  %v5610_v24 = vld [vmem:[%s6198_s13 + $0x80] sm:$0xff] (%p1465_p3)  ;;  %v5660_v37 = vld [vmem:[%s6198_s13 + $0xd0] sm:$0xff] (%p1465_p3) }
 0x372   : >> { %3897 = vmatprep.subr.bf16.mxu0 %v5036_v46  ;;  %3877 = vmatprep.subr.bf16.mxu1 %v4971_v33  ;;  %v5650_v33 = vld [vmem:[%s6198_s13 + $0xc0] sm:$0xff] (%p1465_p3)  ;;  %v5680_v46 = vld [vmem:[%s6198_s13 + $0xf0] sm:$0xff] (%p1465_p3) }
 0x375   : >> { %3899 = vmatpush3.bf16.msra.mxu0 %v4996_v38  ;;  %3879 = vmatpush3.bf16.msra.mxu1 %v4931_v25  ;;  %v5615_v25 = vld [vmem:[%s6198_s13 + $0x88] sm:$0xff] (%p1465_p3)  ;;  %v5665_v38 = vld [vmem:[%s6198_s13 + $0xd8] sm:$0xff] (%p1465_p3) }
 0x376   : >> { %3901 = vmatprep.subr.bf16.mxu0 %v5041_v47  ;;  %3881 = vmatprep.subr.bf16.mxu1 %v4976_v34  ;;  %v5655_v34 = vld [vmem:[%s6198_s13 + $0xc8] sm:$0xff] (%p1465_p3)  ;;  %v5685_v47 = vld [vmem:[%s6198_s13 + $0xf8] sm:$0xff] (%p1465_p3) }
 0x379   : >> { %3903 = vmatpush3.bf16.msra.mxu0 %v5001_v39  ;;  %3883 = vmatpush3.bf16.msra.mxu1 %v6140_v2  ;;  %v5670_v39 = vld [vmem:[%s6198_s13 + $0xe0] sm:$0xff] (%p1465_p3) }
 0x37a   : >> { %3905 = vmatprep.subr.bf16.mxu0 %v6141_v35  ;;  %3885 = vmatprep.subr.bf16.mxu1 %v6142_v40  ;;  %v6158_v35 = vld [vmem:[#allocation49_spill] sm:$0xff] }
 0x37d   : >> { %3907 = vmatpush3.bf16.msra.mxu0 %v6143_v55  ;;  %3887 = vmatpush3.bf16.msra.mxu1 %v6144_v60  ;;  %v6159_v55 = vld [vmem:[#allocation41_spill] sm:$0xff] }
 0x37e   : >> { %3909 = vmatprep.subr.bf16.mxu0 %v6145_v52  ;;  %3889 = vmatprep.subr.bf16.mxu1 %v6146_v58  ;;  %v6160_v58 = vld [vmem:[#allocation50_spill] sm:$0xff] }
 0x381   : >> { %3911 = vmatpush3.bf16.msra.mxu0 %v6147_v4  ;;  %3891 = vmatpush3.bf16.msra.mxu1 %v6148_v5  ;;  %v6162_v4 = vld [vmem:[#allocation56_spill] sm:$0xff]  ;;  %v6163_v5 = vld [vmem:[#allocation51_spill] sm:$0xff] }
 0x382   : >> { %3913 = vmatprep.subr.bf16.mxu0 %v6149_v8  ;;  %3925 = vmatprep.subr.bf16.mxu1 %v6150_v9  ;;  %v6164_v8 = vld [vmem:[#allocation65_spill] sm:$0xff]  ;;  %v6165_v9 = vld [vmem:[#allocation43_spill] sm:$0xff] }
 0x385   : >> { %3915 = vmatpush3.bf16.msra.mxu0 %v6151_v11  ;;  %v6166_v11 = vld [vmem:[#allocation57_spill] sm:$0xff] }
 0x386   : >> { %3917 = vmatprep.subr.bf16.mxu0 %v6152_v3 }
 0x389   : >> { %3919 = vmatpush3.bf16.msra.mxu0 %v6153_v0  ;;  %v6167_v0 = vld [vmem:[#allocation52_spill] sm:$0xff] }
 0x38a   : >> { %3921 = vmatprep.subr.bf16.mxu0 %v6154_v10  ;;  %v6168_v10 = vld [vmem:[#allocation66_spill] sm:$0xff] }
 0x38d   : >> { %3923 = vmatpush3.bf16.msra.mxu0 %v6155_v1 }
 0x38e   : >> { %3957 = vmatprep.subr.bf16.mxu0 %v6156_v48  ;;  %v6169_v48 = vld [vmem:[#allocation44_spill] sm:$0xff] }
 0x433   : >> { %v1951_v28 = vpop.f32.mrb[4].mxu1 }
 0x434   : >> { %v1953_v51 = vpop.f32.mrb[5].mxu1 }
 0x435   : >> { %2239 = vmatprep.mubr.f32.mxu1 %v1953_v51  ;;  %v6171_v51 = vld [vmem:[#allocation53_spill] sm:$0xff] }
 0x436   : >> { %2240 = vmatmul.mubr.f32.vlgmr.msra.gmra.mrb[8].mxu1 %v1951_v28  ;;  %v6170_v28 = vld [vmem:[#allocation58_spill] sm:$0xff] }
 0x437   : >> { %3927 = vmatpush3.bf16.msra.mxu1 %v6157_v43  ;;  %v2093_v2 = vpop.f32.mrb[6].mxu1  ;;  %v6172_v43 = vld [vmem:[#allocation67_spill] sm:$0xff] }
 0x438   : >> { %3929 = vmatprep.subr.bf16.mxu1 %v6158_v35  ;;  %v2095_v40 = vpop.f32.mrb[7].mxu1  ;;  %v6173_v35 = vld [vmem:[#allocation45_spill] sm:$0xff] }
 0x439   : >> { %2379 = vmatprep.mubr.f32.mxu1 %v2095_v40  ;;  %v6174_v40 = vld [vmem:[#allocation59_spill] sm:$0xff] }
 0x43b   : >> { %3931 = vmatpush3.bf16.msra.mxu1 %v6159_v55  ;;  %v2022_v60 = vpop.f32.mrb[14].mxu0  ;;  %v6175_v55 = vld [vmem:[#allocation54_spill] sm:$0xff] }
 0x43c   : >> { %v2024_v52 = vpop.f32.mrb[15].mxu0  ;;  %3933 = vmatprep.subr.bf16.mxu1 %v6160_v58  ;;  %v6178_v58 = vld [vmem:[#allocation60_spill] sm:$0xff] }
 0x43d   : >> { %2309 = vmatprep.mubr.f32.mxu0 %v2024_v52  ;;  %v6177_v52 = vld [vmem:[#allocation46_spill] sm:$0xff] }
 0x43e   : >> { %2310 = vmatmul.mubr.f32.vlgmr.msra.gmra.mrb[18].mxu0 %v2022_v60  ;;  %v6176_v60 = vld [vmem:[#allocation68_spill] sm:$0xff] }
 0x43f   : >> { %3935 = vmatpush3.bf16.msra.mxu1 %v6161_v36  ;;  %3959 = vmatpush3.bf16.msra.mxu0 %v6162_v4  ;;  %v6179_v36 = vld [vmem:[#allocation55_spill] sm:$0xff]  ;;  %v6180_v4 = vld [vmem:[#allocation69_spill] sm:$0xff] }
 0x440   : >> { %3937 = vmatprep.subr.bf16.mxu1 %v6163_v5  ;;  %3961 = vmatprep.subr.bf16.mxu0 %v6164_v8  ;;  %v6181_v5 = vld [vmem:[#allocation47_spill] sm:$0xff]  ;;  %v6182_v8 = vld [vmem:[#allocation61_spill] sm:$0xff] }
 0x443   : >> { %3939 = vmatpush3.bf16.msra.mxu1 %v6165_v9  ;;  %3963 = vmatpush3.bf16.msra.mxu0 %v6166_v11  ;;  %v2164_v3 = vpop.f32.mrb[16].mxu0  ;;  %v6183_v9 = vld [vmem:[#allocation70_spill] sm:$0xff] }
 0x444   : >> { %3941 = vmatprep.subr.bf16.mxu1 %v6167_v0  ;;  %3965 = vmatprep.subr.bf16.mxu0 %v6168_v10  ;;  %v2166_v1 = vpop.f32.mrb[17].mxu0  ;;  %v6184_v11 = vld [vmem:[#allocation62_spill] sm:$0xff]  ;;  %v6185_v0 = vld [vmem:[#allocation71_spill] sm:$0xff] }
 0x445   : >> { %2449 = vmatprep.mubr.f32.mxu0 %v2166_v1  ;;  %v6186_v10 = vld [vmem:[#allocation63_spill] sm:$0xff]  ;;  %v6187_v1 = vld [vmem:[#allocation72_spill] sm:$0xff] }
 0x447   : >> { %3943 = vmatpush3.bf16.msra.mxu1 %v6169_v48  ;;  %3967 = vmatpush3.bf16.msra.mxu0 %v6170_v28  ;;  %v6188_v48 = vld [vmem:[#allocation73_spill] sm:$0xff] }
 0x448   : >> { %3945 = vmatprep.subr.bf16.mxu1 %v6171_v51  ;;  %3969 = vmatprep.subr.bf16.mxu0 %v6172_v43  ;;  %v3989_v28 = vpack.c.bf16 %v6188_v48, %v6187_v1  ;;  %v4503_v51 = vmov 0.0|0.0   ;;  %v6189_v43 = vld [vmem:[#allocation74_spill] sm:$0xff] }
 0x44b   : >> { %3947 = vmatpush3.bf16.msra.mxu1 %v6173_v35  ;;  %3971 = vmatpush3.bf16.msra.mxu0 %v6174_v40  ;;  %v6190_v35 = vld [vmem:[#allocation75_spill] sm:$0xff] }
 0x44c   : >> { %3949 = vmatprep.subr.bf16.mxu1 %v6175_v55  ;;  %3973 = vmatprep.subr.bf16.mxu0 %v6176_v60  ;;  %v3992_v40 = vpack.c.bf16 %v6190_v35, %v6189_v43  ;;  %v6192_v55 = vld [vmem:[#allocation77_spill] sm:$0xff] }
 0x44f   : >> { %3951 = vmatpush3.bf16.msra.mxu1 %v6177_v52  ;;  %3975 = vmatpush3.bf16.msra.mxu0 %v6178_v58  ;;  %v6193_v52 = vld [vmem:[#allocation78_spill] sm:$0xff]  ;;  %v6194_v58 = vld [vmem:[#allocation79_spill] sm:$0xff] }
 0x450   : >> { %3953 = vmatprep.subr.bf16.mxu1 %v6179_v36  ;;  %3977 = vmatprep.subr.bf16.mxu0 %v6180_v4 }
 0x453   : >> { %3955 = vmatpush3.bf16.msra.mxu1 %v6181_v5  ;;  %3979 = vmatpush3.bf16.msra.mxu0 %v6182_v8 }
 0x454   : >> { %3981 = vmatprep.subr.bf16.mxu0 %v6183_v9  ;;  %3988 = vmatprep.subr.bf16.mxu1 %v4503_v51 }
 0x456   : >> { %2380 = vmatmul.mubr.f32.vlgmr.msra.gmra.mrb[10].mxu1 %v2093_v2  ;;  %v6191_v2 = vld [vmem:[#allocation76_spill] sm:$0xff] }
 0x457   : >> { %3983 = vmatpush3.bf16.msra.mxu0 %v6184_v11  ;;  %3990 = vmatpush3.bf16.msra.mxu1 %v3989_v28  ;;  %v3995_v60 = vpack.c.bf16 %v6192_v55, %v6191_v2  ;;  %v6195_v11 = vld [vmem:[#allocation81_spill] sm:$0xff] }
 0x458   : >> { %3985 = vmatprep.subr.bf16.mxu0 %v6185_v0  ;;  %3991 = vmatprep.subr.bf16.mxu1 %v4503_v51 }
 0x459   : >> { %3761 = vmatprep.mubr.msk.f32.mxu1 %vm4504_vm4, %v6139_v7 }
 0x45b   : >> { %3987 = vmatpush3.bf16.msra.mxu0 %v6186_v10  ;;  %3993 = vmatpush3.bf16.msra.mxu1 %v3992_v40 }
 0x45c   : >> { %3994 = vmatprep.subr.bf16.mxu1 %v4503_v51 }
 0x45e   : >> { %2450 = vmatmul.mubr.f32.vlgmr.msra.gmra.mrb[20].mxu0 %v2164_v3  ;;  %v3998_v3 = vpack.c.bf16 %v6194_v58, %v6193_v52 }
 0x45f   : >> { %3996 = vmatpush3.bf16.msra.mxu1 %v3995_v60  ;;  %v2458_v60 = vpop.permute.xlu0 %2457 }
 0x460   : >> { %3997 = vmatprep.subr.bf16.mxu1 %v4503_v51 }
 0x463   : >> { %3999 = vmatpush3.bf16.msra.mxu1 %v3998_v3  ;;  %v6196_v3 = vld [vmem:[#allocation80_spill] sm:$0xff] }
 0x509   : >> { %v3595_v36 = vpop.f32.mrb[8].mxu1 }
 0x50a   : >> { %v3596_v4 = vpop.f32.mrb[9].mxu1 }
 0x50b   : >> { %v3597_v5 = vadd.f32 %v3596_v4, %v3595_v36 }
 0x50d   : >> { %v2242_v0 = vadd.f32 %v3597_v5, %v6195_v11 }
 0x511   : >> { %v3630_v8 = vpop.f32.mrb[18].mxu0 }
 0x512   : >> { %v3631_v9 = vpop.f32.mrb[19].mxu0 }
 0x513   : >> { %v3632_v10 = vadd.f32 %v3631_v9, %v3630_v8 }
 0x515   : >> { %v2312_v1 = vadd.f32 %v3632_v10, %v2242_v0 }
 0x529   : >> { %v3665_v48 = vpop.f32.mrb[10].mxu1 }
 0x52a   : >> { %v3666_v28 = vpop.f32.mrb[11].mxu1 }
 0x52b   : >> { %v3667_v43 = vadd.f32 %v3666_v28, %v3665_v48 }
 0x52d   : >> { %v2382_v51 = vadd.f32 %v3667_v43, %v2312_v1 }
 0x531   : >> { %v3700_v35 = vpop.f32.mrb[20].mxu0 }
 0x532   : >> { %v3701_v40 = vpop.f32.mrb[21].mxu0 }
 0x533   : >> { %v3702_v2 = vadd.f32 %v3701_v40, %v3700_v35 }
 0x535   : >> { %v2452_v55 = vadd.f32 %v3702_v2, %v2382_v51 }
 0x537   : >> { %v2455_v52 = vmax.f32 %v2452_v55, 0.0 }
 0x539   : >> { %v2460_v7 = vsel %vm1551_vm3, %v2455_v52, %v2458_v60 }
 0x53a   : >> { %3762 = vmatmul.mubr.msk.f32.vlgmr.msra.gmra.mrb[12].mxu1 %vm2467_vm5, %v2460_v7  ;;  %v5530_v7 = vld [vmem:[%s6198_s13] sm:$0xff] (%p1465_p3) }
 0x60d   : >> { %v2537_v58 = vpop.f32.mrb[12].mxu1 }
 0x60e   : >> { %v2538_v36 = vadd.f32 %v6196_v3, %v2537_v58  ;;  %v3763_v4 = vpop.f32.mrb[13].mxu1  ;;  %v5540_v58 = vld [vmem:[%s6198_s13 + $0x10] sm:$0xff] (%p1465_p3)  ;;  %v5750_v3 = vld [vmem:[%s6198_s13 + $0x160] sm:$0xff] (%p1465_p3) }
 0x60f   : > { %6199 = vst [vmem:[#allocation18_spill] sm:$0xff] (%p1465_p3), %v5750_v3  ;;  %v5760_v4 = vld [vmem:[%s6198_s13 + $0x170] sm:$0xff] (%p1465_p3) }
 0x610   : >> { %2548 = vrot.lane.b32.xlu0 %v2538_v36, %s4502_s25  ;;  %v2541_v5 = vsub.f32 0.0, %v2538_v36  ;;  %6200 = vst [vmem:[#allocation19_spill] sm:$0xff] (%p1465_p3), %v5760_v4 }
 0x612   : >> { %v2542_v8 = vmul.f32 1.442695, %v2541_v5  ;;  %v5765_v5 = vld [vmem:[%s6198_s13 + $0x178] sm:$0xff] (%p1465_p3) }
 0x613   : > { %6201 = vst [vmem:[#allocation20_spill] sm:$0xff] (%p1465_p3), %v5765_v5 }
 0x614   : >> { %4231 = vpow2.f32 %v2542_v8  ;;  %v5770_v8 = vld [vmem:[%s6202_s28] sm:$0x3] (%p1465_p3) }
 0x61e   : >> { %v4232_v9 = vpop.eup %4231 }
 0x61f   : >> { %v2544_v11 = vadd.f32 1.0, %v4232_v9 }
 0x621   : >> { %4233 = vrcp.f32 %v2544_v11  ;;  %v6203_v11 = vmax.f32 (%p1465_p3), %v5313_v42, 0.0  }
 0x62b   : >> { %v4234_v0 = vpop.eup %4233 }
 0x62c   : >> { %v2558_v51 = vsub.f32 1.0, %v4234_v0  ;;  %v2564_v40 = vmul.f32 %v4234_v0, %v2458_v60  ;;  %v5535_v60 = vld [vmem:[%s6198_s13 + $0x8] sm:$0xff] (%p1465_p3) }
 0x682   : >> { %v2549_v10 = vpop.permute.xlu0 %2548 }
 0x683   : >> { %v2551_v1 = vmul.f32 %v4234_v0, %v2549_v10  ;;  %v5777_v10 = vmov (%p1465_p3), 0.0  }
 0x685   : >> { %2553 = vrot.lane.b32.xlu1 %v2551_v1, %s4505_s21  ;;  %v5779_v1 = vmov (%p1465_p3), 0.0  }
 0x6f7   : >> { %v2554_v48 = vpop.permute.xlu1 %2553 }
 0x6f8   : >> { %v2556_v28 = vadd.f32 %v2554_v48, %v2538_v36  ;;  %v5781_v48 = vmov (%p1465_p3), 0.0  }
 0x6fa   : >> { %4235 = vtanh.f32 %v2556_v28 }
 0x704   : >> { %v4236_v43 = vpop.eup %4235 }
 0x705   : >> { %2560 = vrot.lane.b32.xlu1 %v4236_v43, %s4506_s27 }
 0x777   : >> { %v2561_v35 = vpop.permute.xlu1 %2560 }
 0x778   : >> { %v2563_v2 = vmul.f32 %v2561_v35, %v2558_v51 }
 0x77a   : >> { %v2565_v55 = vadd.f32 %v2564_v40, %v2563_v2 }
 0x77c   : >> { %2567 = vrot.lane.b32.xlu0 %v2565_v55, %s4506_s27 }
 0x7e9   : > { %1467 = sbr.rel (!%p1465_p3) target bundleno = 419 (0x1a3), region = 172 }
 0x7ee   : >> { %v2568_v52 = vpop.permute.xlu0 %2567  }
 0x7ef   : >> { %v6197_v36 = vmov %v2568_v52  ;;  %2571 = vrot.lane.b32.xlu0 (%p1465_p3), %v2568_v52, %s4507_s18 }
 0x7f0   : > { %v5755_v36 = vld [vmem:[%s6198_s13 + $0x168] sm:$0xff] }
 0x861   : > { %v2572_v9 = vpop.permute.xlu0 %2571 }
 0x862   : > { %v5775_v0 = vsel %vm1551_vm3, %v6203_v11, %v2572_v9 }
 0x863 LB: >> { %v4000_v42 = vpack.c.bf16 %v5545_v6, %v5535_v60  ;;  %v4002_v28 = vpack.c.bf16 %v5540_v58, %v5530_v7  ;;  %v4004_v43 = vpack.c.bf16 %v5565_v15, %v5555_v13  ;;  %s4508_s22 = smov 64   ;;  %v4006_v51 = vpack.c.bf16 %v5560_v14, %v5550_v12  ;;  %v6204_v5 = vld [vmem:[#allocation20_spill] sm:$0xff]  ;;  %v6205_v3 = vld [vmem:[#allocation18_spill] sm:$0xff]  ;;  %v6206_v4 = vld [vmem:[#allocation19_spill] sm:$0xff]  ;;  %s2630_s20 = sadd.s32 1, %s4490_s20   ;;  %s4490_s20 = sphi %s5783_s20, %s2630_s20   ;;  %v4486_v48 = vphi %v5781_v48, %v2743_v48   ;;  %v4482_v1 = vphi %v5779_v1, %v2741_v1   ;;  %v4478_v10 = vphi %v5777_v10, %v6210_v10  }
 0x864   : >> { %2635 = vrot.lane.b32.xlu0 %v4486_v48, %s4508_s22  ;;  %v4008_v35 = vpack.c.bf16 %v5585_v19, %v5575_v17  ;;  %v4010_v40 = vpack.c.bf16 %v5580_v18, %v5570_v16  ;;  %v4012_v2 = vpack.c.bf16 %v5605_v23, %v5595_v21  ;;  %v4014_v55 = vpack.c.bf16 %v5600_v22, %v5590_v20  ;;  %p2627_p7 = scmp.ge.s32.totalorder %s2630_s20, 3  }
 0x865   : >> { %4001 = vmatprep.subr.bf16.mxu0 %v4000_v42  ;;  %v4016_v52 = vpack.c.bf16 %v5625_v27, %v5615_v25  ;;  %v4018_v9 = vpack.c.bf16 %v5620_v26, %v5610_v24  ;;  %v4020_v11 = vpack.c.bf16 %v5645_v32, %v5635_v30  ;;  %v4022_v48 = vpack.c.bf16 %v5640_v31, %v5630_v29  ;;  %s6212_s1 = sld [smem:[#allocation93_spill]] (%p2627_p7)  ;;  %v3000_v13 = vld [vmem:[#allocation2] sm:$0x1] (%p2627_p7)  ;;  %s6214_s26 = sld [smem:[#allocation94_spill]] (%p2627_p7) }
 0x866   : >> { %4003 = vmatpush1.bf16.msra.mxu0 %v4002_v28  ;;  %v4024_v42 = vpack.c.bf16 %v5665_v38, %v5655_v34  ;;  %v4026_v28 = vpack.c.bf16 %v5660_v37, %v5650_v33  ;;  %vm4510_vm6 = vmmov 0   ;;  %vm2822_vm7 = vcmask 57344   ;;  %v6215_v33 = vld [vmem:[#allocation84_spill] sm:$0xff] (%p2627_p7)  ;;  %s3229_s25 = sshll.u32 (%p2627_p7), %s4632_s17, 4  ;;  %s3027_s21 = sshll.u32 (%p2627_p7), %s676_s29, 4  ;;  %s5939_s21 = int_to_ptr.vmem [resolvable:$true] %s3027_s21 }
 0x867   : >> { %4005 = vmatprep.subr.bf16.mxu0 %v4004_v43  ;;  %v4028_v43 = vpack.c.bf16 %v5685_v47, %v5675_v45  ;;  %v4511_v60 = vmov (%p2627_p7), 0   ;;  %s6216_s24 = sld [smem:[#allocation95_spill]] (%p2627_p7)  ;;  %s3015_s28 = scalar_lea.sflag (%p2627_p7), [#allocation5], %s4806_s7 }
 0x868   : > { %4253 = vset.pattern.permute.xlu0 (%p2627_p7), %v4511_v60  ;;  %s4368_s20 = scalar_lea.vmem (%p2627_p7), %s5939_s21, 16  ;;  %s4512_s17 = smov (%p2627_p7), [#allocation11]  }
 0x869   : > { %p4369_p11 = scmp.ne.s32.totalorder (%p2627_p7), %s5939_s21, %s4368_s20 }
 0x86a   : >> { %4007 = vmatpush1.bf16.msra.mxu0 %v4006_v51  ;;  %v4030_v51 = vpack.c.bf16 %v5680_v46, %v5670_v39 }
 0x86b   : >> { %4009 = vmatprep.subr.bf16.mxu0 %v4008_v35  ;;  %v4032_v35 = vpack.c.bf16 %v5705_v57, %v5695_v50  ;;  %v2916_v7 = vld [vmem:[%s6212_s1 + $0x18] sm:$0xff] (%p2627_p7)  ;;  %v2917_v6 = vld [vmem:[%s6212_s1 + $0x20] sm:$0xff] (%p2627_p7)  ;;  %v2918_v12 = vld [vmem:[%s6212_s1 + $0x28] sm:$0xff] (%p2627_p7)  ;;  %p4370_p1 = pnand (%p2627_p7), %p4369_p11, %p4761_p5 }
 0x86c   : > { %v4055_v14 = vpack.c.bf16 (%p2627_p7), %v2918_v12, %v2917_v6  ;;  %v2919_v15 = vld [vmem:[%s6212_s1 + $0x30] sm:$0xff] (%p2627_p7)  ;;  %v2920_v16 = vld [vmem:[%s6212_s1 + $0x38] sm:$0xff] (%p2627_p7)  ;;  %v2921_v18 = vld [vmem:[%s6212_s1 + $0x40] sm:$0xff] (%p2627_p7) }
 0x86d   : > { %v4058_v17 = vpack.c.bf16 (%p2627_p7), %v2920_v16, %v2919_v15  ;;  %v2922_v19 = vld [vmem:[%s6212_s1 + $0x48] sm:$0xff] (%p2627_p7)  ;;  %v2923_v21 = vld [vmem:[%s6212_s1 + $0x50] sm:$0xff] (%p2627_p7)  ;;  %v2924_v22 = vld [vmem:[%s6212_s1 + $0x58] sm:$0xff] (%p2627_p7)  ;;  %s5937_s2 = scalar_lea.hbm (%p2627_p7), %s6216_s24, %s3229_s25  ;;  %p4371_p2 = pneg (%p2627_p7), %p4370_p1 }
 0x86e   : >> { %4011 = vmatpush1.bf16.msra.mxu0 %v4010_v40  ;;  %v4034_v40 = vpack.c.bf16 %v5700_v53, %v5690_v49  ;;  %v4061_v20 = vpack.c.bf16 (%p2627_p7), %v2922_v19, %v2921_v18  ;;  %v4064_v23 = vpack.c.bf16 (%p2627_p7), %v2924_v22, %v2923_v21  ;;  %v2925_v24 = vld [vmem:[%s6212_s1 + $0x60] sm:$0xff] (%p2627_p7)  ;;  %v2926_v25 = vld [vmem:[%s6212_s1 + $0x68] sm:$0xff] (%p2627_p7)  ;;  %v2927_v27 = vld [vmem:[%s6212_s1 + $0x70] sm:$0xff] (%p2627_p7) }
 0x86f   : >> { %4013 = vmatprep.subr.bf16.mxu0 %v4012_v2  ;;  %v4036_v2 = vpack.c.bf16 %v5725_v63, %v5715_v54  ;;  %v4067_v26 = vpack.c.bf16 (%p2627_p7), %v2926_v25, %v2925_v24  ;;  %v2928_v29 = vld [vmem:[%s6212_s1 + $0x78] sm:$0xff] (%p2627_p7)  ;;  %v2929_v32 = vld [vmem:[%s6214_s26] sm:$0x1] (%p2627_p7) }
 0x870   : > { %v4070_v30 = vpack.c.bf16 (%p2627_p7), %v2928_v29, %v2927_v27 }
 0x872   : >> { %4015 = vmatpush1.bf16.msra.mxu0 %v4014_v55  ;;  %v4038_v55 = vpack.c.bf16 %v5720_v44, %v5710_v61 }
 0x873   : >> { %4017 = vmatprep.subr.bf16.mxu0 %v4016_v52  ;;  %v4040_v52 = vpack.c.bf16 %v5745_v59, %v5735_v62 }
 0x876   : >> { %4019 = vmatpush1.bf16.msra.mxu0 %v4018_v9  ;;  %v4042_v9 = vpack.c.bf16 %v5740_v41, %v5730_v56 }
 0x877   : >> { %4021 = vmatprep.subr.bf16.mxu0 %v4020_v11  ;;  %v4044_v11 = vpack.c.bf16 %v6204_v5, %v5755_v36 }
 0x87a   : >> { %4023 = vmatpush1.bf16.msra.mxu0 %v4022_v48  ;;  %v4046_v48 = vpack.c.bf16 %v6206_v4, %v6205_v3 }
 0x87b   : >> { %4025 = vmatprep.subr.bf16.mxu0 %v4024_v42 }
 0x87e   : >> { %4027 = vmatpush1.bf16.msra.mxu0 %v4026_v28  ;;  %v6207_v28 = vld [vmem:[#allocation84_spill] sm:$0xff] }
 0x87f   : >> { %4029 = vmatprep.subr.bf16.mxu0 %v4028_v43  ;;  %v2641_v43 = vrot.slane %v5770_v8, %v6207_v28  ;;  %v4509_v28 = vmov 0.0  }
 0x880   : >> { %3764 = vmatprep.subr.mxu1 %v4509_v28  ;;  %3766 = vmatprep.mubr.msk.f32.mxu1 %vm4510_vm6, %v4509_v28 }
 0x881   : >> { %3765 = vmatpush3.xpose.msk.msra.mxu1 %vm2467_vm5, %v5775_v0 }
 0x882   : >> { %4031 = vmatpush1.bf16.msra.mxu0 %v4030_v51  ;;  %3769 = vmatprep.subr.mxu1 %v4509_v28 }
 0x883   : >> { %4033 = vmatprep.subr.bf16.mxu0 %v4032_v35 }
 0x886   : >> { %4035 = vmatpush1.bf16.msra.mxu0 %v4034_v40 }
 0x887   : >> { %4037 = vmatprep.subr.bf16.mxu0 %v4036_v2 }
 0x88a   : >> { %4039 = vmatpush1.bf16.msra.mxu0 %v4038_v55 }
 0x88b   : >> { %4041 = vmatprep.subr.bf16.mxu0 %v4040_v52  ;;  %v6208_v52 = vld [vmem:[#allocation83_spill] sm:$0xff] }
 0x88e   : >> { %4043 = vmatpush1.bf16.msra.mxu0 %v4042_v9  ;;  %v6209_v9 = vsub.s32 1, %v6208_v52 }
 0x88f   : >> { %4045 = vmatprep.subr.bf16.mxu0 %v4044_v11 }
 0x890   : >> { %v2645_v5 = vrot.slane %v5770_v8, %v6209_v9 }
 0x892   : >> { %4047 = vmatpush1.bf16.msra.mxu0 %v4046_v48 }
 0x8d6   : >> { %v2636_v42 = vpop.permute.xlu0 %2635 }
 0x8d7   : >> { %3225 = vmatprep.mubr.msk.f32.mxu0 %vm2467_vm5, %v2636_v42 }
 0x8d8   : >> { %2716 = vmatmul.mubr.f32.vlgmr.msra.gmra.mrb[0].mxu0 %v4478_v10 }
 0x9ab   : >> { %v2717_v51 = vpop.f32.mrb[0].mxu0 }
 0x9ac   : >> { %v2718_v35 = vadd.f32 %v2717_v51, %v2641_v43  ;;  %v2719_v40 = vpop.f32.mrb[1].mxu0 }
 0x9ad   : >> { %v2720_v3 = vadd.f32 %v2719_v40, %v2645_v5 }
 0x9ae   : >> { %v2722_v2 = vsub.f32 0.0, %v2718_v35 }
 0x9af   : >> { %v2729_v43 = vsub.f32 0.0, %v2720_v3 }
 0x9b0   : >> { %v2723_v55 = vmul.f32 1.442695, %v2722_v2 }
 0x9b1   : >> { %v2730_v5 = vmul.f32 1.442695, %v2729_v43 }
 0x9b2   : >> { %4237 = vpow2.f32 %v2723_v55 }
 0x9b3   : >> { %4239 = vtanh.f32 %v2720_v3 }
 0x9bc   : >> { %v4238_v11 = vpop.eup %4237 }
 0x9bd   : >> { %v2725_v48 = vadd.f32 1.0, %v4238_v11  ;;  %v4240_v42 = vpop.eup %4239 }
 0x9bf   : >> { %4241 = vrcp.f32 %v2725_v48 }
 0x9c0   : >> { %4243 = vpow2.f32 %v2730_v5 }
 0x9c9   : >> { %v4242_v10 = vpop.eup %4241 }
 0x9ca   : >> { %v2736_v4 = vmul.f32 %v4242_v10, %v4240_v42  ;;  %v4244_v51 = vpop.eup %4243  ;;  %v2735_v40 = vmul.f32 %v4482_v1, %v4242_v10 }
 0x9cb   : >> { %v2732_v35 = vadd.f32 1.0, %v4244_v51 }
 0x9cc   : >> { %2738 = vrot.lane.b32.xlu0 %v2736_v4, %s4508_s22 }
 0x9cd   : >> { %4245 = vrcp.f32 %v2732_v35 }
 0x9d7   : >> { %v4246_v4 = vpop.eup %4245 }
 0xa3e   : >> { %v2739_v2 = vpop.permute.xlu0 %2738 }
 0xa3f   : >> { %v2741_v1 = vadd.f32 %v2739_v2, %v2735_v40  }
 0xa41   : >> { %4247 = vtanh.f32 %v2741_v1 }
 0xa4b   : >> { %v4248_v55 = vpop.eup %4247 }
 0xa4c   : >> { %v2743_v48 = vmul.f32 %v4248_v55, %v4246_v4  }
 0xa4e   : >> { %2745 = vrot.lane.b32.xlu1 %v2743_v48, %s4508_s22 }
 0xac0   : >> { %v2746_v52 = vpop.permute.xlu1 %2745 }
 0xac1   : >> { %3767 = vmatmul.mubr.msk.f32.vlgmr.msra.gmra.mrb[0].mxu1 %vm2467_vm5, %v2746_v52 }
 0xac2   : >> { %3770 = vmatpush3.msra.mxu1 %v5775_v0  ;;  %3771 = vmatprep.mubr.msk.f32.mxu1 %vm4510_vm6, %v4509_v28 }
 0xb94   : >> { %v2818_v3 = vpop.f32.mrb[0].mxu1 }
 0xb95   : >> { %v3768_v9 = vpop.f32.mrb[1].mxu1  ;;  %v2823_v11 = vsel %vm2822_vm7, %v2818_v3, -inf }
 0xb96   : >> { %2824 = vmax.xlane.f32.xlu1 %v2823_v11  ;;  %v2913_v11 = vld [vmem:[%s6212_s1] sm:$0xff] (%p2627_p7) }
 0xc23   : >> { %v2825_v42 = vpop.xlane.xlu1 %2824 }
 0xc24   : >> { %v2826_v10 = vsub.f32 %v2818_v3, %v2825_v42  ;;  %v6211_v3 = vmov (%p2627_p7), 0.0|0.0   ;;  %v2915_v42 = vld [vmem:[%s6212_s1 + $0x10] sm:$0xff] (%p2627_p7) }
 0xc25   : > { %4048 = vmatprep.subr.bf16.mxu0 (%p2627_p7), %v6211_v3  ;;  %v4052_v58 = vpack.c.bf16 (%p2627_p7), %v2916_v7, %v2915_v42 }
 0xc26   : >> { %v2827_v43 = vmul.f32 1.442695, %v2826_v10 }
 0xc28   : >> { %4249 = vpow2.f32 %v2827_v43  ;;  %v6213_v43 = vmov (%p2627_p7), 0.0  }
 0xc29   : > { %3806 = vmatprep.mubr.msk.f32.mxu0 (%p2627_p7), %vm4500_vm0, %v6213_v43 }
 0xc32   : >> { %v4250_v5 = vpop.eup %4249 }
 0xc33   : >> { %v2829_v51 = vsel %vm2822_vm7, %v4250_v5, 0.0 }
 0xc34   : >> { %2830 = vadd.xlane.f32.xlu0 %v2829_v51 }
 0xcc1   : >> { %v2831_v35 = vpop.xlane.xlu0 %2830 }
 0xcc2   : >> { %4251 = vrcp.f32 %v2831_v35 }
 0xccc   : >> { %v4252_v40 = vpop.eup %4251 }
 0xccd   : >> { %v2833_v2 = vmul.f32 %v4252_v40, %v4250_v5 }
 0xccf   : >> { %3772 = vmatmul.mubr.msk.f32.vlgmr.msra.gmra.mrb[2].mxu1 %vm828_vm1, %v2833_v2 }
 0xda2   : >> { %v2903_v4 = vpop.f32.mrb[2].mxu1 }
 0xda3   : >> { %2909 = vrot.lane.b32.xlu0 %v2903_v4, %s4508_s22  ;;  %v3773_v28 = vpop.f32.mrb[3].mxu1  ;;  %s4372_s22 = sshll.u32 (%p2627_p7), %s4512_s17, 4  ;;  %s4373_s22 = int_to_ptr.vmem [resolvable:$false] %s4372_s22 }
 0xda4   : > { %s4374_s18 = scalar_lea.vmem (%p2627_p7), %s4373_s22, 32  ;;  %p4375_p4 = scmp.lt.s32.totalorder (%p2627_p7), %s5939_s21, %s4373_s22 }
 0xda5   : > { %p4376_p13 = scmp.lt.s32.totalorder (%p2627_p7), %s4374_s18, %s4368_s20 }
 0xda7   : > { %3004 = vperm.xlu0 (%p2627_p7), %4253, %v3000_v13   ;;  %p4377_p9 = por (%p2627_p7), %p4376_p13, %p4375_p4 }
 0xda9   : > { %p4378_p8 = pnand (%p2627_p7), %p4377_p9, %p4371_p2 }
 0xe11   : > { %2629 = sbr.rel (!%p2627_p7) target bundleno = 2147 (0x863), region = 183 }
 0xe15   : >> { %v2910_v55 = vpop.permute.xlu0 %2909 }
 0xe16   : >> { %v2912_v9 = vsel %vm2467_vm5, %v2746_v52, %v2910_v55   ;;  %v2914_v52 = vld [vmem:[%s6212_s1 + $0x8] sm:$0xff] (%p2627_p7) }
 0xe17   : >> { %v6210_v10 = vmov %v2912_v9  ;;  %v4049_v48 = vpack.c.bf16 (%p2627_p7), %v2914_v52, %v2913_v11 }
 0xe19   : > { %4050 = vmatpush3.bf16.msra.mxu0 %v4049_v48 }
 0xe1a   : > { %4051 = vmatprep.subr.bf16.mxu0 %v6211_v3 }
 0xe1d   : > { %4053 = vmatpush3.bf16.msra.mxu0 %v4052_v58 }
 0xe1e   : > { %4054 = vmatprep.subr.bf16.mxu0 %v6211_v3 }
 0xe21   : > { %4056 = vmatpush3.bf16.msra.mxu0 %v4055_v14 }
 0xe22   : > { %4057 = vmatprep.subr.bf16.mxu0 %v6211_v3 }
 0xe25   : > { %4059 = vmatpush3.bf16.msra.mxu0 %v4058_v17 }
 0xe26   : > { %4060 = vmatprep.subr.bf16.mxu0 %v6211_v3  ;;  %v3005_v31 = vpop.permute.xlu0 %3004 }
 0xe27   : > { %v3010_v34 = vrot.slane %v3005_v31, %v6215_v33 }
 0xe29   : > { %4062 = vmatpush3.bf16.msra.mxu0 %v4061_v20 }
 0xe2a   : > { %4063 = vmatprep.subr.bf16.mxu0 %v6211_v3 }
 0xe2d   : > { %4065 = vmatpush3.bf16.msra.mxu0 %v4064_v23 }
 0xe2e   : > { %4066 = vmatprep.subr.bf16.mxu0 %v6211_v3 }
 0xe31   : > { %4068 = vmatpush3.bf16.msra.mxu0 %v4067_v26 }
 0xe32   : > { %4069 = vmatprep.subr.bf16.mxu0 %v6211_v3 }
 0xe35   : > { %4071 = vmatpush3.bf16.msra.mxu0 %v4070_v30 }
 0xe38   : > { %3807 = vmatmul.mubr.f32.vlgmr.msra.gmra.mrb[0].mxu0 %v2912_v9 }
 0xf0b   : > { %v2996_v37 = vpop.f32.mrb[0].mxu0 }
 0xf0c   : > { %v2997_v38 = vadd.f32 %v2996_v37, %v2929_v32  ;;  %v3808_v39 = vpop.f32.mrb[1].mxu0 }
 0xf0e   : > { %vm3001_vm8 = vcmp.gt.f32.partialorder %v2997_v38, 0.0  ;;  %v3011_v45 = vmul.f32 %v3010_v34, %v2997_v38 }
 0xf10   : > { %v3012_v46 = vsel %vm3001_vm8, %v2997_v38, %v3011_v45 }
 0xf11   : > { %3013 = vst [vmem:[%s676_s29] sm:$0x1] %v3012_v46 }
 0xf12   : > { %4381 = shalt.err (!%p4378_p8)
}
 0xf13   : > { %s4382_s7 = scalar_lea.hbm %s5937_s2, 16  ;;  %s4386_s25 = scalar_lea.hbm %s6216_s24, 64 }
 0xf14   : > { %p4383_p10 = scmp.ne.s32.totalorder %s5937_s2, %s4382_s7  ;;  %p4387_p0 = scmp.lt.u32.totalorder %s5937_s2, %s6216_s24 }
 0xf15   : > { %p4388_p3 = scmp.lt.u32.totalorder %s4386_s25, %s4382_s7  ;;  %p4390_p11 = scmp.lt.u32.totalorder %s4382_s7, %s5937_s2 }
 0xf16   : > { %p4384_p12 = pnand %p4383_p10, %p4761_p5 }
 0xf17   : > { %p4389_p7 = por %p4388_p3, %p4387_p0 }
 0xf18   : > { %p4385_p6 = pneg %p4384_p12 }
 0xf19   : > { %p4391_p1 = por %p4390_p11, %p4389_p7 }
 0xf1b   : > { %p4392_p2 = pnand %p4391_p1, %p4385_p6 }
 0xf1d   : > { %4395 = shalt.err (!%p4392_p2)
}
 0xf1e   : > { %4104 = dma.vmem_to_hbm [thread:$0]  (%p4761_p5), %s5939_s21, 16, %s5937_s2, %s3015_s28  }
 0xf1f PF: > { %s6217_s20 = sld [smem:[#allocation16_spill]]  ;;  %s6218_s17 = sld [smem:[#allocation17_spill]] }
 0xf20   : > { %p4131_p4 = scmp.ge.s32.totalorder %s4466_s19, 2 }
 0xf25   : > { %s3039_s22 = sand.u32 1, %s6217_s20   ;;  %p6219_p13 = scmp.ne.s32.totalorder %s6218_s17, 0 }
 0xf26   : > { %s3040_s18 = scalar_lea.sflag [#allocation5], %s3039_s22 }
 0xf27   : > { %p4121_p9 = pnand %p4131_p4, %p6219_p13 }
 0xf29   : > { %4449 = dma.done.wait (!%p4121_p9), %s3040_s18, 16  }
 0xf2a   : > { %4451 = vsyncadd (!%p4121_p9), %s3040_s18, 4294967280  ;;  %p35_p8 = scmp.ge.s32.totalorder %s4747_s16, 6   ;;  %s6220_s29 = smov %s4458_s30 }
 0xf2b   : > { %s6221_s30 = smov %s4462_s0  ;;  %s6222_s0 = smov %s4757_s14 }
 0xf2c   : > { %s6223_s19 = smov %s4747_s16  ;;  %37 = sbr.rel (!%p35_p8) target bundleno = 17 (0x11), region = 194 }
 0xf33   :  { %3044 = vsyncpa [#allocation4], 1 }
 0xf34   :  { %3046 = vsyncpa [#allocation4 + $0x1], 1 }
 0xf35   :  { %3047 = vsyncpa [#allocation7], 1 }
 0xf36   :  { %3048 = vsyncpa [#allocation10], 1 }
 0xf37   :  { %3049 = vsyncpa [#allocation5], 1 }
 0xf38   :  { %3051 = vsyncpa [#allocation5 + $0x1], 1 }

</bundles_post_ra>
